<compile_context>
chip_gen: v7x
topology: tpu7x:2x2x1
jax: 0.10.0
libtpu: 0.0.40
codegen_flags: <defaults>
</compile_context>

<pallas_src>
import functools

import jax
import jax.numpy as jnp
from jax.experimental import pallas as pl
from jax.experimental.pallas import tpu as pltpu


def _round_up(x, m):
    return (x + m - 1) // m * m


def _vmem_capacity_bytes():
    try:
        return int(pltpu.get_tpu_info().vmem_capacity_bytes)
    except Exception:
        return 64 * 1024 * 1024  # conservative default (v7x per-TC VMEM)


def _layer_sizing(T, Bp, Dinp, Hp, y_bytes, tt_cap=32):
    """Pick timesteps-per-grid-step TT and a vmem limit from the footprint."""
    G = 4 * Hp
    cap = _vmem_capacity_bytes()
    # Fixed VMEM: resident bf16 weights + f32 bias (counted double-buffered,
    # BlockSpec default), h0/c0 in + hT/cT out, and the h/c f32 scratch.
    fixed = 2 * (Dinp * G * 2 + Hp * G * 2 + G * 4)
    fixed += 2 * 4 * Bp * Hp * 4 + 2 * Bp * Hp * 4
    # Per-TT bytes: x double-buffer (bf16) + y double-buffer + gx scratch (f32).
    per_tt = Bp * (2 * 2 * Dinp + 2 * y_bytes * Hp + 4 * G)
    budget = max(cap // 2, 16 * 1024 * 1024)
    tt = (budget - fixed) // per_tt if budget > fixed else 1
    tt = int(max(1, min(tt_cap, T, tt)))
    est = fixed + per_tt * tt + (4 << 20)          # margin for compiler internals
    vmem_limit = int(min(cap * 7 // 8, max(32 * 1024 * 1024, est * 3 // 2)))
    return tt, vmem_limit


# -----------------------------------------------------------------------------
# Pallas kernel: one LSTM layer, TT timesteps per grid step.
# Grid axis 0 = sequential blocks of TT timesteps ("arbitrary").
# x/y are flattened 2D (Tp*Bp, D) so every block is lane/sublane dense.
# -----------------------------------------------------------------------------
def _lstm_block_kernel(h0_ref, c0_ref, x_ref, wih_ref, whh_ref, b_ref,
                       y_ref, hT_ref, cT_ref,
                       h_sc, c_sc, gx_sc, *, TT, Bp, Hp, t_valid):
    tb = pl.program_id(0)

    @pl.when(tb == 0)
    def _():
        h_sc[...] = h0_ref[...]
        c_sc[...] = c0_ref[...]

    # Fused block input projection (off the per-timestep serial chain):
    # (TT*Bp, Dinp) x (Dinp, 4*Hp) bf16 GEMM, f32 accumulate, f32 bias add.
    gx_sc[...] = (
        jnp.dot(x_ref[...], wih_ref[...], preferred_element_type=jnp.float32)
        + b_ref[...])

    def step(i, carry):
        h, c = carry                                   # f32, vreg-resident
        r0 = pl.multiple_of(i * Bp, 8)
        # Only the small recurrent matmul remains on the serial chain.
        gates = gx_sc[pl.ds(r0, Bp), :] + jnp.dot(
            h.astype(jnp.bfloat16), whh_ref[...],
            preferred_element_type=jnp.float32)
        # Gate slices are lane-aligned (Hp is a multiple of 128).
        i_g = jax.nn.sigmoid(gates[:, 0 * Hp:1 * Hp])
        f_g = jax.nn.sigmoid(gates[:, 1 * Hp:2 * Hp])
        g_g = jnp.tanh(gates[:, 2 * Hp:3 * Hp])
        o_g = jax.nn.sigmoid(gates[:, 3 * Hp:4 * Hp])
        c_new = f_g * c + i_g * g_g
        h_new = o_g * jnp.tanh(c_new)
        y_ref[pl.ds(r0, Bp), :] = h_new.astype(y_ref.dtype)
        if t_valid is not None:
            # Masked tail block: freeze the state past the real sequence end.
            valid = (tb * TT + i) < t_valid
            h_new = jnp.where(valid, h_new, h)
            c_new = jnp.where(valid, c_new, c)
        return h_new, c_new

    h, c = jax.lax.fori_loop(0, TT, step, (h_sc[...], c_sc[...]), unroll=True)
    h_sc[...] = h
    c_sc[...] = c

    # Final states are written once, on the last grid step only.
    @pl.when(tb == pl.num_programs(0) - 1)
    def _():
        hT_ref[...] = h_sc[...]
        cT_ref[...] = c_sc[...]


def lstm_layer_pallas(x, h0p, c0p, w_ih_p, w_hh_p, bias_p, *,
                      y_dtype=jnp.bfloat16, tt_cap=32):
    """One LSTM layer over padded inputs.

    x:       (T, Bp, Dinp)  bfloat16 (lane/sublane padded; padded cols zero)
    h0p,c0p: (Bp, Hp)       float32 padded initial state
    w_ih_p:  (Dinp, 4*Hp)   bfloat16 (gate-padded, pre-transposed)
    w_hh_p:  (Hp, 4*Hp)     bfloat16 (gate-padded, pre-transposed)
    bias_p:  (1, 4*Hp)      float32  (gate-padded b_ih + b_hh)
    Returns y (T, Bp, Hp) in y_dtype, hT (Bp, Hp) f32, cT (Bp, Hp) f32.
    """
    T, Bp, Dinp = x.shape
    Hp = w_hh_p.shape[0]
    G = 4 * Hp
    y_bytes = jnp.dtype(y_dtype).itemsize

    TT, vmem_limit = _layer_sizing(T, Bp, Dinp, Hp, y_bytes, tt_cap)
    n_blocks = pl.cdiv(T, TT)
    Tp = n_blocks * TT
    if Tp != T:
        x = jnp.pad(x, ((0, Tp - T), (0, 0), (0, 0)))
    x2 = x.reshape(Tp * Bp, Dinp)                     # lane/sublane dense 2D

    kernel = functools.partial(
        _lstm_block_kernel, TT=TT, Bp=Bp, Hp=Hp,
        t_valid=(T if Tp != T else None))

    grid_spec = pltpu.PrefetchScalarGridSpec(
        num_scalar_prefetch=0,
        grid=(n_blocks,),
        in_specs=[
            pl.BlockSpec((Bp, Hp), lambda t: (0, 0)),          # h0
            pl.BlockSpec((Bp, Hp), lambda t: (0, 0)),          # c0
            pl.BlockSpec((TT * Bp, Dinp), lambda t: (t, 0)),   # x block (TT steps)
            pl.BlockSpec((Dinp, G), lambda t: (0, 0)),         # W_ih (resident)
            pl.BlockSpec((Hp, G), lambda t: (0, 0)),           # W_hh (resident)
            pl.BlockSpec((1, G), lambda t: (0, 0)),            # bias (resident)
        ],
        out_specs=[
            pl.BlockSpec((TT * Bp, Hp), lambda t: (t, 0)),     # y block
            pl.BlockSpec((Bp, Hp), lambda t: (0, 0)),          # h_T
            pl.BlockSpec((Bp, Hp), lambda t: (0, 0)),          # c_T
        ],
        scratch_shapes=[
            pltpu.VMEM((Bp, Hp), jnp.float32),                 # h carry (per block)
            pltpu.VMEM((Bp, Hp), jnp.float32),                 # c carry (per block)
            pltpu.VMEM((TT * Bp, G), jnp.float32),             # fused gx block
        ],
    )

    y2, hT, cT = pl.pallas_call(
        kernel,
        out_shape=(
            jax.ShapeDtypeStruct((Tp * Bp, Hp), y_dtype),
            jax.ShapeDtypeStruct((Bp, Hp), jnp.float32),
            jax.ShapeDtypeStruct((Bp, Hp), jnp.float32),
        ),
        grid_spec=grid_spec,
        compiler_params=pltpu.CompilerParams(
            dimension_semantics=("arbitrary",),
            vmem_limit_bytes=vmem_limit),
    )(h0p, c0p, x2, w_ih_p, w_hh_p, bias_p)

    y = y2.reshape(Tp, Bp, Hp)[:T]
    return y, hT, cT


# -----------------------------------------------------------------------------
# Model container (parameter packing + glue in plain JAX).
# -----------------------------------------------------------------------------
class RNNModelPallas:
    """JAX/Pallas equivalent of the PyTorch RNNModel (rnn_type='LSTM', eval mode)."""

    def __init__(self, ntoken, ninp, nhid, nlayers=3, tie_weights=True,
                 key=jax.random.PRNGKey(0)):
        self.ntoken = ntoken
        self.ninp = ninp
        self.nhid = nhid
        self.nlayers = nlayers
        self.tie_weights = tie_weights

        keys = jax.random.split(key, 1 + 4 * nlayers)
        initrange = 0.1
        # encoder: Embedding(ntoken, ninp), uniform(-0.1, 0.1).
        # decoder.weight is tied to it and unused by forward().
        self.enc_w = jax.random.uniform(keys[0], (ntoken, ninp),
                                        minval=-initrange, maxval=initrange,
                                        dtype=jnp.float32)

        self.in_dims, self.out_dims, self.hp, self.dinp = [], [], [], []
        # raw PyTorch-layout params (kept for the f32 reference check)
        self.w_ih_raw, self.w_hh_raw, self.b_ih_raw, self.b_hh_raw = [], [], [], []
        # packed kernel params: gate-padded, transposed, bf16 weights
        self.w_ih, self.w_hh, self.bias = [], [], []

        for l in range(nlayers):
            ninput = ninp if l == 0 else nhid
            noutput = nhid if l != nlayers - 1 else (ninp if tie_weights else nhid)
            Hp = _round_up(noutput, 128)
            Dinp = _round_up(ninput, 128)      # == previous layer's Hp for l > 0
            self.in_dims.append(ninput)
            self.out_dims.append(noutput)
            self.hp.append(Hp)
            self.dinp.append(Dinp)

            k = 1.0 / jnp.sqrt(jnp.float32(noutput))   # PyTorch LSTM default init
            kw = keys[1 + 4 * l: 1 + 4 * (l + 1)]
            w_ih = jax.random.uniform(kw[0], (4 * noutput, ninput),
                                      minval=-k, maxval=k, dtype=jnp.float32)
            w_hh = jax.random.uniform(kw[1], (4 * noutput, noutput),
                                      minval=-k, maxval=k, dtype=jnp.float32)
            b_ih = jax.random.uniform(kw[2], (4 * noutput,),
                                      minval=-k, maxval=k, dtype=jnp.float32)
            b_hh = jax.random.uniform(kw[3], (4 * noutput,),
                                      minval=-k, maxval=k, dtype=jnp.float32)
            self.w_ih_raw.append(w_ih)
            self.w_hh_raw.append(w_hh)
            self.b_ih_raw.append(b_ih)
            self.b_hh_raw.append(b_hh)

            # --- pack: transpose, split gates, pad to lane/sublane tiles ---
            # W_ih: (4H, Din) -> (Din, 4, H) -> pad -> (Dinp, 4*Hp) bf16
            w_ih_t = w_ih.T.reshape(ninput, 4, noutput)
            w_ih_p = jnp.pad(w_ih_t,
                             ((0, Dinp - ninput), (0, 0), (0, Hp - noutput)))
            w_ih_p = w_ih_p.reshape(Dinp, 4 * Hp).astype(jnp.bfloat16)
            # W_hh: (4H, H) -> (H, 4, H) -> pad rows & gate cols -> (Hp, 4*Hp)
            w_hh_t = w_hh.T.reshape(noutput, 4, noutput)
            w_hh_p = jnp.pad(w_hh_t,
                             ((0, Hp - noutput), (0, 0), (0, Hp - noutput)))
            w_hh_p = w_hh_p.reshape(Hp, 4 * Hp).astype(jnp.bfloat16)
            # bias: (4H,) -> (4, H) -> pad -> (1, 4*Hp) f32, pre-summed
            b = (b_ih + b_hh).reshape(4, noutput)
            b_p = jnp.pad(b, ((0, 0), (0, Hp - noutput))).reshape(1, 4 * Hp)

            self.w_ih.append(w_ih_p)
            self.w_hh.append(w_hh_p)
            self.bias.append(b_p)

    def init_hidden(self, bsz):
        hidden = []
        for l in range(self.nlayers):
            dim = self.out_dims[l]
            hidden.append((jnp.zeros((1, bsz, dim), jnp.float32),
                           jnp.zeros((1, bsz, dim), jnp.float32)))
        return hidden

    def forward(self, tokens, hidden, return_h=False):
        """tokens: (T, B) int32; hidden: list of (h, c) each (1, B, dim)."""
        T, B = tokens.shape
        Bp = _round_up(B, 8)
        # embedded_dropout / lockdrop(dropouti) are identity in eval mode.
        emb = self.enc_w[tokens]                               # (T, B, ninp)
        x = jnp.zeros((T, Bp, self.dinp[0]), jnp.bfloat16)
        x = x.at[:, :B, :self.ninp].set(emb.astype(jnp.bfloat16))

        new_hidden, raw_outputs, outputs = [], [], []
        y = None
        for l in range(self.nlayers):
            h0, c0 = hidden[l]
            H, Hp = self.out_dims[l], self.hp[l]
            h0p = jnp.zeros((Bp, Hp), jnp.float32).at[:B, :H].set(h0[0])
            c0p = jnp.zeros((Bp, Hp), jnp.float32).at[:B, :H].set(c0[0])
            last = (l == self.nlayers - 1)
            y, hT, cT = lstm_layer_pallas(
                x, h0p, c0p, self.w_ih[l], self.w_hh[l], self.bias[l],
                y_dtype=(jnp.float32 if last else jnp.bfloat16))
            new_hidden.append((hT[:B, :H][None], cT[:B, :H][None]))
            if return_h:
                raw_outputs.append(y[:, :B, :H].astype(jnp.float32))
                if not last:
                    # lockdrop(dropouth) identity in eval mode
                    outputs.append(raw_outputs[-1])
            x = y   # padded output feeds the next layer directly (no re-pad)

        # lockdrop(dropout) identity in eval mode
        output = y[:, :B, :self.out_dims[-1]]                  # f32
        result = output.reshape(T * B, output.shape[2])
        if return_h:
            outputs.append(output)
            return result, new_hidden, raw_outputs, outputs
        return result, new_hidden


# -----------------------------------------------------------------------------
# Pure-JAX full-f32 reference (lax.scan LSTM, raw PyTorch-layout weights).
# -----------------------------------------------------------------------------
def _lstm_layer_ref(x, h0, c0, w_ih, w_hh, b_ih, b_hh):
    H = h0.shape[-1]

    def step(carry, x_t):
        h, c = carry
        gates = x_t @ w_ih.T + h @ w_hh.T + b_ih + b_hh
        i = jax.nn.sigmoid(gates[:, 0:H])
        f = jax.nn.sigmoid(gates[:, H:2 * H])
        g = jnp.tanh(gates[:, 2 * H:3 * H])
        o = jax.nn.sigmoid(gates[:, 3 * H:4 * H])
        c = f * c + i * g
        h = o * jnp.tanh(c)
        return (h, c), h

    (hT, cT), ys = jax.lax.scan(step, (h0, c0), x)
    return ys, hT, cT


def _forward_ref(model, tokens, hidden):
    x = model.enc_w[tokens]
    new_hidden = []
    for l in range(model.nlayers):
        h0, c0 = hidden[l]
        x, hT, cT = _lstm_layer_ref(x, h0[0], c0[0],
                                    model.w_ih_raw[l], model.w_hh_raw[l],
                                    model.b_ih_raw[l], model.b_hh_raw[l])
        new_hidden.append((hT[None], cT[None]))
    return x.reshape(x.shape[0] * x.shape[1], x.shape[2]), new_hidden


# -----------------------------------------------------------------------------
if __name__ == "__main__":
    ntoken, ninp, nhid, nlayers = 50, 32, 64, 3
    T, B = 8, 2

    key = jax.random.PRNGKey(0)
    k_model, k_tok = jax.random.split(key)

    model = RNNModelPallas(ntoken, ninp, nhid, nlayers, tie_weights=True, key=k_model)
    tokens = jax.random.randint(k_tok, (T, B), 0, ntoken, dtype=jnp.int32)
    hidden = model.init_hidden(B)

    result, new_hidden = model.forward(tokens, hidden)
    result = jax.block_until_ready(result)
    new_hidden = jax.tree_util.tree_map(jax.block_until_ready, new_hidden)

    # sanity checks against the pure-JAX f32 reference (bf16-weight/activation
    # drift is well within these tolerances at this scale)
    ref_result, ref_hidden = _forward_ref(model, tokens, hidden)
    assert result.shape == (T * B, ninp), result.shape
    assert jnp.allclose(result, ref_result, atol=2e-2, rtol=2e-2)
    for (h_p, c_p), (h_r, c_r) in zip(new_hidden, ref_hidden):
        assert jnp.allclose(h_p, h_r, atol=2e-2, rtol=2e-2)
        assert jnp.allclose(c_p, c_r, atol=2e-2, rtol=2e-2)

    print("KERNEL_OK")
</pallas_src>

<mosaic_0001>
module attributes {stable_mosaic.version = 11 : i64} {
  func.func @_lstm_block_kernel(%arg0: i32, %arg1: memref<8x128xf32, #tpu.memory_space<vmem>>, %arg2: memref<8x128xf32, #tpu.memory_space<vmem>>, %arg3: memref<64x128xbf16, #tpu.memory_space<vmem>>, %arg4: memref<128x512xbf16, #tpu.memory_space<vmem>>, %arg5: memref<128x512xbf16, #tpu.memory_space<vmem>>, %arg6: memref<1x512xf32, #tpu.memory_space<vmem>>, %arg7: memref<64x128xbf16, #tpu.memory_space<vmem>>, %arg8: memref<8x128xf32, #tpu.memory_space<vmem>>, %arg9: memref<8x128xf32, #tpu.memory_space<vmem>>, %arg10: memref<8x128xf32, #tpu.memory_space<vmem>>, %arg11: memref<8x128xf32, #tpu.memory_space<vmem>>, %arg12: memref<64x512xf32, #tpu.memory_space<vmem>>) attributes {dimension_semantics = [#tpu.dimension_semantics<arbitrary>], iteration_bounds = array<i64: 1>, scalar_prefetch = 0 : i64, scratch_operands = 3 : i64, tpu.core_type = #tpu.core_type<tc>, window_params = [{pipeline_mode = #tpu.pipeline_mode<synchronous>, transform_indices = @transform_0, window_bounds = array<i64: 8, 128>}, {pipeline_mode = #tpu.pipeline_mode<synchronous>, transform_indices = @transform_1, window_bounds = array<i64: 8, 128>}, {transform_indices = @transform_2, window_bounds = array<i64: 64, 128>}, {pipeline_mode = #tpu.pipeline_mode<synchronous>, transform_indices = @transform_3, window_bounds = array<i64: 128, 512>}, {pipeline_mode = #tpu.pipeline_mode<synchronous>, transform_indices = @transform_4, window_bounds = array<i64: 128, 512>}, {pipeline_mode = #tpu.pipeline_mode<synchronous>, transform_indices = @transform_5, window_bounds = array<i64: 1, 512>}, {transform_indices = @transform_6, window_bounds = array<i64: 64, 128>}, {pipeline_mode = #tpu.pipeline_mode<synchronous>, transform_indices = @transform_7, window_bounds = array<i64: 8, 128>}, {pipeline_mode = #tpu.pipeline_mode<synchronous>, transform_indices = @transform_8, window_bounds = array<i64: 8, 128>}]} {
    %c0_i32 = arith.constant 0 : i32
    %0 = arith.cmpi eq, %arg0, %c0_i32 : i32
    %1 = arith.extui %0 : i1 to i32
    %c0_i32_0 = arith.constant 0 : i32
    %2 = arith.cmpi ne, %1, %c0_i32_0 : i32
    scf.if %2 {
      %c0_91 = arith.constant 0 : index
      %c0_92 = arith.constant 0 : index
      %305 = vector.load %arg1[%c0_91, %c0_92] : memref<8x128xf32, #tpu.memory_space<vmem>>, vector<8x128xf32>
      %c0_93 = arith.constant 0 : index
      %c0_94 = arith.constant 0 : index
      %306 = vector.load %arg10[%c0_93, %c0_94] : memref<8x128xf32, #tpu.memory_space<vmem>>, vector<8x128xf32>
      tpu.vector_store %arg10[%c0_93, %c0_94], %305 {strides = array<i32>} : memref<8x128xf32, #tpu.memory_space<vmem>>, vector<8x128xf32>,
      %c0_95 = arith.constant 0 : index
      %c0_96 = arith.constant 0 : index
      %307 = vector.load %arg2[%c0_95, %c0_96] : memref<8x128xf32, #tpu.memory_space<vmem>>, vector<8x128xf32>
      %c0_97 = arith.constant 0 : index
      %c0_98 = arith.constant 0 : index
      %308 = vector.load %arg11[%c0_97, %c0_98] : memref<8x128xf32, #tpu.memory_space<vmem>>, vector<8x128xf32>
      tpu.vector_store %arg11[%c0_97, %c0_98], %307 {strides = array<i32>} : memref<8x128xf32, #tpu.memory_space<vmem>>, vector<8x128xf32>,
    } else {
    }
    %c0 = arith.constant 0 : index
    %c0_1 = arith.constant 0 : index
    %3 = vector.load %arg3[%c0, %c0_1] : memref<64x128xbf16, #tpu.memory_space<vmem>>, vector<64x128xbf16>
    %c0_2 = arith.constant 0 : index
    %c0_3 = arith.constant 0 : index
    %4 = vector.load %arg4[%c0_2, %c0_3] : memref<128x512xbf16, #tpu.memory_space<vmem>>, vector<128x512xbf16>
    %cst = arith.constant dense<0.000000e+00> : vector<64x512xf32>
    %5 = tpu.matmul %3, %4, %cst {dimension_numbers = #tpu.dot_dimension_numbers<[1], [0], [0], [1], [0, 0, 1, 1], [], []>} : vector<64x128xbf16>, vector<128x512xbf16>, vector<64x512xf32> -> vector<64x512xf32>
    %c0_4 = arith.constant 0 : index
    %c0_5 = arith.constant 0 : index
    %6 = vector.load %arg6[%c0_4, %c0_5] : memref<1x512xf32, #tpu.memory_space<vmem>>, vector<1x512xf32>
    %7 = vector.broadcast %6 : vector<1x512xf32> to vector<64x512xf32>
    %8 = arith.addf %5, %7 : vector<64x512xf32>
    %c0_6 = arith.constant 0 : index
    %c0_7 = arith.constant 0 : index
    %9 = vector.load %arg12[%c0_6, %c0_7] : memref<64x512xf32, #tpu.memory_space<vmem>>, vector<64x512xf32>
    tpu.vector_store %arg12[%c0_6, %c0_7], %8 {strides = array<i32>} : memref<64x512xf32, #tpu.memory_space<vmem>>, vector<64x512xf32>,
    %c0_8 = arith.constant 0 : index
    %c0_9 = arith.constant 0 : index
    %10 = vector.load %arg10[%c0_8, %c0_9] : memref<8x128xf32, #tpu.memory_space<vmem>>, vector<8x128xf32>
    %c0_10 = arith.constant 0 : index
    %c0_11 = arith.constant 0 : index
    %11 = vector.load %arg11[%c0_10, %c0_11] : memref<8x128xf32, #tpu.memory_space<vmem>>, vector<8x128xf32>
    %c0_i32_12 = arith.constant 0 : i32
    %c8_i32 = arith.constant 8 : i32
    %12 = arith.muli %c0_i32_12, %c8_i32 : i32
    %13 = tpu.assume_multiple %12, 8 : i32
    %14 = arith.index_cast %13 : i32 to index
    %c0_13 = arith.constant 0 : index
    %15 = vector.load %arg12[%14, %c0_13] : memref<64x512xf32, #tpu.memory_space<vmem>>, vector<8x512xf32>
    %16 = arith.truncf %10 : vector<8x128xf32> to vector<8x128xbf16>
    %c0_14 = arith.constant 0 : index
    %c0_15 = arith.constant 0 : index
    %17 = vector.load %arg5[%c0_14, %c0_15] : memref<128x512xbf16, #tpu.memory_space<vmem>>, vector<128x512xbf16>
    %cst_16 = arith.constant dense<0.000000e+00> : vector<8x512xf32>
    %18 = tpu.matmul %16, %17, %cst_16 {dimension_numbers = #tpu.dot_dimension_numbers<[1], [0], [0], [1], [0, 0, 1, 1], [], []>} : vector<8x128xbf16>, vector<128x512xbf16>, vector<8x512xf32> -> vector<8x512xf32>
    %19 = arith.addf %15, %18 : vector<8x512xf32>
    %20 = vector.extract_strided_slice %19 {offsets = [0, 0], sizes = [8, 128], strides = [1, 1]} : vector<8x512xf32> to vector<8x128xf32>
    %21 = arith.negf %20 : vector<8x128xf32>
    %22 = math.exp %21 : vector<8x128xf32>
    %cst_17 = arith.constant 1.000000e+00 : f32
    %23 = vector.broadcast %cst_17 : f32 to vector<8x128xf32>
    %24 = arith.addf %23, %22 : vector<8x128xf32>
    %25 = arith.divf %23, %24 : vector<8x128xf32>
    %26 = vector.extract_strided_slice %19 {offsets = [0, 128], sizes = [8, 128], strides = [1, 1]} : vector<8x512xf32> to vector<8x128xf32>
    %27 = arith.negf %26 : vector<8x128xf32>
    %28 = math.exp %27 : vector<8x128xf32>
    %cst_18 = arith.constant 1.000000e+00 : f32
    %29 = vector.broadcast %cst_18 : f32 to vector<8x128xf32>
    %30 = arith.addf %29, %28 : vector<8x128xf32>
    %31 = arith.divf %29, %30 : vector<8x128xf32>
    %32 = vector.extract_strided_slice %19 {offsets = [0, 256], sizes = [8, 128], strides = [1, 1]} : vector<8x512xf32> to vector<8x128xf32>
    %33 = math.tanh %32 : vector<8x128xf32>
    %34 = vector.extract_strided_slice %19 {offsets = [0, 384], sizes = [8, 128], strides = [1, 1]} : vector<8x512xf32> to vector<8x128xf32>
    %35 = arith.negf %34 : vector<8x128xf32>
    %36 = math.exp %35 : vector<8x128xf32>
    %cst_19 = arith.constant 1.000000e+00 : f32
    %37 = vector.broadcast %cst_19 : f32 to vector<8x128xf32>
    %38 = arith.addf %37, %36 : vector<8x128xf32>
    %39 = arith.divf %37, %38 : vector<8x128xf32>
    %40 = arith.mulf %31, %11 : vector<8x128xf32>
    %41 = arith.mulf %25, %33 : vector<8x128xf32>
    %42 = arith.addf %40, %41 : vector<8x128xf32>
    %43 = math.tanh %42 : vector<8x128xf32>
    %44 = arith.mulf %39, %43 : vector<8x128xf32>
    %45 = arith.truncf %44 : vector<8x128xf32> to vector<8x128xbf16>
    %46 = arith.index_cast %13 : i32 to index
    %c0_20 = arith.constant 0 : index
    %47 = vector.load %arg7[%46, %c0_20] : memref<64x128xbf16, #tpu.memory_space<vmem>>, vector<8x128xbf16>
    tpu.vector_store %arg7[%46, %c0_20], %45 {strides = array<i32>} : memref<64x128xbf16, #tpu.memory_space<vmem>>, vector<8x128xbf16>,
    %c1_i32 = arith.constant 1 : i32
    %c8_i32_21 = arith.constant 8 : i32
    %48 = arith.muli %c1_i32, %c8_i32_21 : i32
    %49 = tpu.assume_multiple %48, 8 : i32
    %50 = arith.index_cast %49 : i32 to index
    %c0_22 = arith.constant 0 : index
    %51 = vector.load %arg12[%50, %c0_22] : memref<64x512xf32, #tpu.memory_space<vmem>>, vector<8x512xf32>
    %52 = arith.truncf %44 : vector<8x128xf32> to vector<8x128xbf16>
    %c0_23 = arith.constant 0 : index
    %c0_24 = arith.constant 0 : index
    %53 = vector.load %arg5[%c0_23, %c0_24] : memref<128x512xbf16, #tpu.memory_space<vmem>>, vector<128x512xbf16>
    %cst_25 = arith.constant dense<0.000000e+00> : vector<8x512xf32>
    %54 = tpu.matmul %52, %53, %cst_25 {dimension_numbers = #tpu.dot_dimension_numbers<[1], [0], [0], [1], [0, 0, 1, 1], [], []>} : vector<8x128xbf16>, vector<128x512xbf16>, vector<8x512xf32> -> vector<8x512xf32>
    %55 = arith.addf %51, %54 : vector<8x512xf32>
    %56 = vector.extract_strided_slice %55 {offsets = [0, 0], sizes = [8, 128], strides = [1, 1]} : vector<8x512xf32> to vector<8x128xf32>
    %57 = arith.negf %56 : vector<8x128xf32>
    %58 = math.exp %57 : vector<8x128xf32>
    %cst_26 = arith.constant 1.000000e+00 : f32
    %59 = vector.broadcast %cst_26 : f32 to vector<8x128xf32>
    %60 = arith.addf %59, %58 : vector<8x128xf32>
    %61 = arith.divf %59, %60 : vector<8x128xf32>
    %62 = vector.extract_strided_slice %55 {offsets = [0, 128], sizes = [8, 128], strides = [1, 1]} : vector<8x512xf32> to vector<8x128xf32>
    %63 = arith.negf %62 : vector<8x128xf32>
    %64 = math.exp %63 : vector<8x128xf32>
    %cst_27 = arith.constant 1.000000e+00 : f32
    %65 = vector.broadcast %cst_27 : f32 to vector<8x128xf32>
    %66 = arith.addf %65, %64 : vector<8x128xf32>
    %67 = arith.divf %65, %66 : vector<8x128xf32>
    %68 = vector.extract_strided_slice %55 {offsets = [0, 256], sizes = [8, 128], strides = [1, 1]} : vector<8x512xf32> to vector<8x128xf32>
    %69 = math.tanh %68 : vector<8x128xf32>
    %70 = vector.extract_strided_slice %55 {offsets = [0, 384], sizes = [8, 128], strides = [1, 1]} : vector<8x512xf32> to vector<8x128xf32>
    %71 = arith.negf %70 : vector<8x128xf32>
    %72 = math.exp %71 : vector<8x128xf32>
    %cst_28 = arith.constant 1.000000e+00 : f32
    %73 = vector.broadcast %cst_28 : f32 to vector<8x128xf32>
    %74 = arith.addf %73, %72 : vector<8x128xf32>
    %75 = arith.divf %73, %74 : vector<8x128xf32>
    %76 = arith.mulf %67, %42 : vector<8x128xf32>
    %77 = arith.mulf %61, %69 : vector<8x128xf32>
    %78 = arith.addf %76, %77 : vector<8x128xf32>
    %79 = math.tanh %78 : vector<8x128xf32>
    %80 = arith.mulf %75, %79 : vector<8x128xf32>
    %81 = arith.truncf %80 : vector<8x128xf32> to vector<8x128xbf16>
    %82 = arith.index_cast %49 : i32 to index
    %c0_29 = arith.constant 0 : index
    %83 = vector.load %arg7[%82, %c0_29] : memref<64x128xbf16, #tpu.memory_space<vmem>>, vector<8x128xbf16>
    tpu.vector_store %arg7[%82, %c0_29], %81 {strides = array<i32>} : memref<64x128xbf16, #tpu.memory_space<vmem>>, vector<8x128xbf16>,
    %c2_i32 = arith.constant 2 : i32
    %c8_i32_30 = arith.constant 8 : i32
    %84 = arith.muli %c2_i32, %c8_i32_30 : i32
    %85 = tpu.assume_multiple %84, 8 : i32
    %86 = arith.index_cast %85 : i32 to index
    %c0_31 = arith.constant 0 : index
    %87 = vector.load %arg12[%86, %c0_31] : memref<64x512xf32, #tpu.memory_space<vmem>>, vector<8x512xf32>
    %88 = arith.truncf %80 : vector<8x128xf32> to vector<8x128xbf16>
    %c0_32 = arith.constant 0 : index
    %c0_33 = arith.constant 0 : index
    %89 = vector.load %arg5[%c0_32, %c0_33] : memref<128x512xbf16, #tpu.memory_space<vmem>>, vector<128x512xbf16>
    %cst_34 = arith.constant dense<0.000000e+00> : vector<8x512xf32>
    %90 = tpu.matmul %88, %89, %cst_34 {dimension_numbers = #tpu.dot_dimension_numbers<[1], [0], [0], [1], [0, 0, 1, 1], [], []>} : vector<8x128xbf16>, vector<128x512xbf16>, vector<8x512xf32> -> vector<8x512xf32>
    %91 = arith.addf %87, %90 : vector<8x512xf32>
    %92 = vector.extract_strided_slice %91 {offsets = [0, 0], sizes = [8, 128], strides = [1, 1]} : vector<8x512xf32> to vector<8x128xf32>
    %93 = arith.negf %92 : vector<8x128xf32>
    %94 = math.exp %93 : vector<8x128xf32>
    %cst_35 = arith.constant 1.000000e+00 : f32
    %95 = vector.broadcast %cst_35 : f32 to vector<8x128xf32>
    %96 = arith.addf %95, %94 : vector<8x128xf32>
    %97 = arith.divf %95, %96 : vector<8x128xf32>
    %98 = vector.extract_strided_slice %91 {offsets = [0, 128], sizes = [8, 128], strides = [1, 1]} : vector<8x512xf32> to vector<8x128xf32>
    %99 = arith.negf %98 : vector<8x128xf32>
    %100 = math.exp %99 : vector<8x128xf32>
    %cst_36 = arith.constant 1.000000e+00 : f32
    %101 = vector.broadcast %cst_36 : f32 to vector<8x128xf32>
    %102 = arith.addf %101, %100 : vector<8x128xf32>
    %103 = arith.divf %101, %102 : vector<8x128xf32>
    %104 = vector.extract_strided_slice %91 {offsets = [0, 256], sizes = [8, 128], strides = [1, 1]} : vector<8x512xf32> to vector<8x128xf32>
    %105 = math.tanh %104 : vector<8x128xf32>
    %106 = vector.extract_strided_slice %91 {offsets = [0, 384], sizes = [8, 128], strides = [1, 1]} : vector<8x512xf32> to vector<8x128xf32>
    %107 = arith.negf %106 : vector<8x128xf32>
    %108 = math.exp %107 : vector<8x128xf32>
    %cst_37 = arith.constant 1.000000e+00 : f32
    %109 = vector.broadcast %cst_37 : f32 to vector<8x128xf32>
    %110 = arith.addf %109, %108 : vector<8x128xf32>
    %111 = arith.divf %109, %110 : vector<8x128xf32>
    %112 = arith.mulf %103, %78 : vector<8x128xf32>
    %113 = arith.mulf %97, %105 : vector<8x128xf32>
    %114 = arith.addf %112, %113 : vector<8x128xf32>
    %115 = math.tanh %114 : vector<8x128xf32>
    %116 = arith.mulf %111, %115 : vector<8x128xf32>
    %117 = arith.truncf %116 : vector<8x128xf32> to vector<8x128xbf16>
    %118 = arith.index_cast %85 : i32 to index
    %c0_38 = arith.constant 0 : index
    %119 = vector.load %arg7[%118, %c0_38] : memref<64x128xbf16, #tpu.memory_space<vmem>>, vector<8x128xbf16>
    tpu.vector_store %arg7[%118, %c0_38], %117 {strides = array<i32>} : memref<64x128xbf16, #tpu.memory_space<vmem>>, vector<8x128xbf16>,
    %c3_i32 = arith.constant 3 : i32
    %c8_i32_39 = arith.constant 8 : i32
    %120 = arith.muli %c3_i32, %c8_i32_39 : i32
    %121 = tpu.assume_multiple %120, 8 : i32
    %122 = arith.index_cast %121 : i32 to index
    %c0_40 = arith.constant 0 : index
    %123 = vector.load %arg12[%122, %c0_40] : memref<64x512xf32, #tpu.memory_space<vmem>>, vector<8x512xf32>
    %124 = arith.truncf %116 : vector<8x128xf32> to vector<8x128xbf16>
    %c0_41 = arith.constant 0 : index
    %c0_42 = arith.constant 0 : index
    %125 = vector.load %arg5[%c0_41, %c0_42] : memref<128x512xbf16, #tpu.memory_space<vmem>>, vector<128x512xbf16>
    %cst_43 = arith.constant dense<0.000000e+00> : vector<8x512xf32>
    %126 = tpu.matmul %124, %125, %cst_43 {dimension_numbers = #tpu.dot_dimension_numbers<[1], [0], [0], [1], [0, 0, 1, 1], [], []>} : vector<8x128xbf16>, vector<128x512xbf16>, vector<8x512xf32> -> vector<8x512xf32>
    %127 = arith.addf %123, %126 : vector<8x512xf32>
    %128 = vector.extract_strided_slice %127 {offsets = [0, 0], sizes = [8, 128], strides = [1, 1]} : vector<8x512xf32> to vector<8x128xf32>
    %129 = arith.negf %128 : vector<8x128xf32>
    %130 = math.exp %129 : vector<8x128xf32>
    %cst_44 = arith.constant 1.000000e+00 : f32
    %131 = vector.broadcast %cst_44 : f32 to vector<8x128xf32>
    %132 = arith.addf %131, %130 : vector<8x128xf32>
    %133 = arith.divf %131, %132 : vector<8x128xf32>
    %134 = vector.extract_strided_slice %127 {offsets = [0, 128], sizes = [8, 128], strides = [1, 1]} : vector<8x512xf32> to vector<8x128xf32>
    %135 = arith.negf %134 : vector<8x128xf32>
    %136 = math.exp %135 : vector<8x128xf32>
    %cst_45 = arith.constant 1.000000e+00 : f32
    %137 = vector.broadcast %cst_45 : f32 to vector<8x128xf32>
    %138 = arith.addf %137, %136 : vector<8x128xf32>
    %139 = arith.divf %137, %138 : vector<8x128xf32>
    %140 = vector.extract_strided_slice %127 {offsets = [0, 256], sizes = [8, 128], strides = [1, 1]} : vector<8x512xf32> to vector<8x128xf32>
    %141 = math.tanh %140 : vector<8x128xf32>
    %142 = vector.extract_strided_slice %127 {offsets = [0, 384], sizes = [8, 128], strides = [1, 1]} : vector<8x512xf32> to vector<8x128xf32>
    %143 = arith.negf %142 : vector<8x128xf32>
    %144 = math.exp %143 : vector<8x128xf32>
    %cst_46 = arith.constant 1.000000e+00 : f32
    %145 = vector.broadcast %cst_46 : f32 to vector<8x128xf32>
    %146 = arith.addf %145, %144 : vector<8x128xf32>
    %147 = arith.divf %145, %146 : vector<8x128xf32>
    %148 = arith.mulf %139, %114 : vector<8x128xf32>
    %149 = arith.mulf %133, %141 : vector<8x128xf32>
    %150 = arith.addf %148, %149 : vector<8x128xf32>
    %151 = math.tanh %150 : vector<8x128xf32>
    %152 = arith.mulf %147, %151 : vector<8x128xf32>
    %153 = arith.truncf %152 : vector<8x128xf32> to vector<8x128xbf16>
    %154 = arith.index_cast %121 : i32 to index
    %c0_47 = arith.constant 0 : index
    %155 = vector.load %arg7[%154, %c0_47] : memref<64x128xbf16, #tpu.memory_space<vmem>>, vector<8x128xbf16>
    tpu.vector_store %arg7[%154, %c0_47], %153 {strides = array<i32>} : memref<64x128xbf16, #tpu.memory_space<vmem>>, vector<8x128xbf16>,
    %c4_i32 = arith.constant 4 : i32
    %c8_i32_48 = arith.constant 8 : i32
    %156 = arith.muli %c4_i32, %c8_i32_48 : i32
    %157 = tpu.assume_multiple %156, 8 : i32
    %158 = arith.index_cast %157 : i32 to index
    %c0_49 = arith.constant 0 : index
    %159 = vector.load %arg12[%158, %c0_49] : memref<64x512xf32, #tpu.memory_space<vmem>>, vector<8x512xf32>
    %160 = arith.truncf %152 : vector<8x128xf32> to vector<8x128xbf16>
    %c0_50 = arith.constant 0 : index
    %c0_51 = arith.constant 0 : index
    %161 = vector.load %arg5[%c0_50, %c0_51] : memref<128x512xbf16, #tpu.memory_space<vmem>>, vector<128x512xbf16>
    %cst_52 = arith.constant dense<0.000000e+00> : vector<8x512xf32>
    %162 = tpu.matmul %160, %161, %cst_52 {dimension_numbers = #tpu.dot_dimension_numbers<[1], [0], [0], [1], [0, 0, 1, 1], [], []>} : vector<8x128xbf16>, vector<128x512xbf16>, vector<8x512xf32> -> vector<8x512xf32>
    %163 = arith.addf %159, %162 : vector<8x512xf32>
    %164 = vector.extract_strided_slice %163 {offsets = [0, 0], sizes = [8, 128], strides = [1, 1]} : vector<8x512xf32> to vector<8x128xf32>
    %165 = arith.negf %164 : vector<8x128xf32>
    %166 = math.exp %165 : vector<8x128xf32>
    %cst_53 = arith.constant 1.000000e+00 : f32
    %167 = vector.broadcast %cst_53 : f32 to vector<8x128xf32>
    %168 = arith.addf %167, %166 : vector<8x128xf32>
    %169 = arith.divf %167, %168 : vector<8x128xf32>
    %170 = vector.extract_strided_slice %163 {offsets = [0, 128], sizes = [8, 128], strides = [1, 1]} : vector<8x512xf32> to vector<8x128xf32>
    %171 = arith.negf %170 : vector<8x128xf32>
    %172 = math.exp %171 : vector<8x128xf32>
    %cst_54 = arith.constant 1.000000e+00 : f32
    %173 = vector.broadcast %cst_54 : f32 to vector<8x128xf32>
    %174 = arith.addf %173, %172 : vector<8x128xf32>
    %175 = arith.divf %173, %174 : vector<8x128xf32>
    %176 = vector.extract_strided_slice %163 {offsets = [0, 256], sizes = [8, 128], strides = [1, 1]} : vector<8x512xf32> to vector<8x128xf32>
    %177 = math.tanh %176 : vector<8x128xf32>
    %178 = vector.extract_strided_slice %163 {offsets = [0, 384], sizes = [8, 128], strides = [1, 1]} : vector<8x512xf32> to vector<8x128xf32>
    %179 = arith.negf %178 : vector<8x128xf32>
    %180 = math.exp %179 : vector<8x128xf32>
    %cst_55 = arith.constant 1.000000e+00 : f32
    %181 = vector.broadcast %cst_55 : f32 to vector<8x128xf32>
    %182 = arith.addf %181, %180 : vector<8x128xf32>
    %183 = arith.divf %181, %182 : vector<8x128xf32>
    %184 = arith.mulf %175, %150 : vector<8x128xf32>
    %185 = arith.mulf %169, %177 : vector<8x128xf32>
    %186 = arith.addf %184, %185 : vector<8x128xf32>
    %187 = math.tanh %186 : vector<8x128xf32>
    %188 = arith.mulf %183, %187 : vector<8x128xf32>
    %189 = arith.truncf %188 : vector<8x128xf32> to vector<8x128xbf16>
    %190 = arith.index_cast %157 : i32 to index
    %c0_56 = arith.constant 0 : index
    %191 = vector.load %arg7[%190, %c0_56] : memref<64x128xbf16, #tpu.memory_space<vmem>>, vector<8x128xbf16>
    tpu.vector_store %arg7[%190, %c0_56], %189 {strides = array<i32>} : memref<64x128xbf16, #tpu.memory_space<vmem>>, vector<8x128xbf16>,
    %c5_i32 = arith.constant 5 : i32
    %c8_i32_57 = arith.constant 8 : i32
    %192 = arith.muli %c5_i32, %c8_i32_57 : i32
    %193 = tpu.assume_multiple %192, 8 : i32
    %194 = arith.index_cast %193 : i32 to index
    %c0_58 = arith.constant 0 : index
    %195 = vector.load %arg12[%194, %c0_58] : memref<64x512xf32, #tpu.memory_space<vmem>>, vector<8x512xf32>
    %196 = arith.truncf %188 : vector<8x128xf32> to vector<8x128xbf16>
    %c0_59 = arith.constant 0 : index
    %c0_60 = arith.constant 0 : index
    %197 = vector.load %arg5[%c0_59, %c0_60] : memref<128x512xbf16, #tpu.memory_space<vmem>>, vector<128x512xbf16>
    %cst_61 = arith.constant dense<0.000000e+00> : vector<8x512xf32>
    %198 = tpu.matmul %196, %197, %cst_61 {dimension_numbers = #tpu.dot_dimension_numbers<[1], [0], [0], [1], [0, 0, 1, 1], [], []>} : vector<8x128xbf16>, vector<128x512xbf16>, vector<8x512xf32> -> vector<8x512xf32>
    %199 = arith.addf %195, %198 : vector<8x512xf32>
    %200 = vector.extract_strided_slice %199 {offsets = [0, 0], sizes = [8, 128], strides = [1, 1]} : vector<8x512xf32> to vector<8x128xf32>
    %201 = arith.negf %200 : vector<8x128xf32>
    %202 = math.exp %201 : vector<8x128xf32>
    %cst_62 = arith.constant 1.000000e+00 : f32
    %203 = vector.broadcast %cst_62 : f32 to vector<8x128xf32>
    %204 = arith.addf %203, %202 : vector<8x128xf32>
    %205 = arith.divf %203, %204 : vector<8x128xf32>
    %206 = vector.extract_strided_slice %199 {offsets = [0, 128], sizes = [8, 128], strides = [1, 1]} : vector<8x512xf32> to vector<8x128xf32>
    %207 = arith.negf %206 : vector<8x128xf32>
    %208 = math.exp %207 : vector<8x128xf32>
    %cst_63 = arith.constant 1.000000e+00 : f32
    %209 = vector.broadcast %cst_63 : f32 to vector<8x128xf32>
    %210 = arith.addf %209, %208 : vector<8x128xf32>
    %211 = arith.divf %209, %210 : vector<8x128xf32>
    %212 = vector.extract_strided_slice %199 {offsets = [0, 256], sizes = [8, 128], strides = [1, 1]} : vector<8x512xf32> to vector<8x128xf32>
    %213 = math.tanh %212 : vector<8x128xf32>
    %214 = vector.extract_strided_slice %199 {offsets = [0, 384], sizes = [8, 128], strides = [1, 1]} : vector<8x512xf32> to vector<8x128xf32>
    %215 = arith.negf %214 : vector<8x128xf32>
    %216 = math.exp %215 : vector<8x128xf32>
    %cst_64 = arith.constant 1.000000e+00 : f32
    %217 = vector.broadcast %cst_64 : f32 to vector<8x128xf32>
    %218 = arith.addf %217, %216 : vector<8x128xf32>
    %219 = arith.divf %217, %218 : vector<8x128xf32>
    %220 = arith.mulf %211, %186 : vector<8x128xf32>
    %221 = arith.mulf %205, %213 : vector<8x128xf32>
    %222 = arith.addf %220, %221 : vector<8x128xf32>
    %223 = math.tanh %222 : vector<8x128xf32>
    %224 = arith.mulf %219, %223 : vector<8x128xf32>
    %225 = arith.truncf %224 : vector<8x128xf32> to vector<8x128xbf16>
    %226 = arith.index_cast %193 : i32 to index
    %c0_65 = arith.constant 0 : index
    %227 = vector.load %arg7[%226, %c0_65] : memref<64x128xbf16, #tpu.memory_space<vmem>>, vector<8x128xbf16>
    tpu.vector_store %arg7[%226, %c0_65], %225 {strides = array<i32>} : memref<64x128xbf16, #tpu.memory_space<vmem>>, vector<8x128xbf16>,
    %c6_i32 = arith.constant 6 : i32
    %c8_i32_66 = arith.constant 8 : i32
    %228 = arith.muli %c6_i32, %c8_i32_66 : i32
    %229 = tpu.assume_multiple %228, 8 : i32
    %230 = arith.index_cast %229 : i32 to index
    %c0_67 = arith.constant 0 : index
    %231 = vector.load %arg12[%230, %c0_67] : memref<64x512xf32, #tpu.memory_space<vmem>>, vector<8x512xf32>
    %232 = arith.truncf %224 : vector<8x128xf32> to vector<8x128xbf16>
    %c0_68 = arith.constant 0 : index
    %c0_69 = arith.constant 0 : index
    %233 = vector.load %arg5[%c0_68, %c0_69] : memref<128x512xbf16, #tpu.memory_space<vmem>>, vector<128x512xbf16>
    %cst_70 = arith.constant dense<0.000000e+00> : vector<8x512xf32>
    %234 = tpu.matmul %232, %233, %cst_70 {dimension_numbers = #tpu.dot_dimension_numbers<[1], [0], [0], [1], [0, 0, 1, 1], [], []>} : vector<8x128xbf16>, vector<128x512xbf16>, vector<8x512xf32> -> vector<8x512xf32>
    %235 = arith.addf %231, %234 : vector<8x512xf32>
    %236 = vector.extract_strided_slice %235 {offsets = [0, 0], sizes = [8, 128], strides = [1, 1]} : vector<8x512xf32> to vector<8x128xf32>
    %237 = arith.negf %236 : vector<8x128xf32>
    %238 = math.exp %237 : vector<8x128xf32>
    %cst_71 = arith.constant 1.000000e+00 : f32
    %239 = vector.broadcast %cst_71 : f32 to vector<8x128xf32>
    %240 = arith.addf %239, %238 : vector<8x128xf32>
    %241 = arith.divf %239, %240 : vector<8x128xf32>
    %242 = vector.extract_strided_slice %235 {offsets = [0, 128], sizes = [8, 128], strides = [1, 1]} : vector<8x512xf32> to vector<8x128xf32>
    %243 = arith.negf %242 : vector<8x128xf32>
    %244 = math.exp %243 : vector<8x128xf32>
    %cst_72 = arith.constant 1.000000e+00 : f32
    %245 = vector.broadcast %cst_72 : f32 to vector<8x128xf32>
    %246 = arith.addf %245, %244 : vector<8x128xf32>
    %247 = arith.divf %245, %246 : vector<8x128xf32>
    %248 = vector.extract_strided_slice %235 {offsets = [0, 256], sizes = [8, 128], strides = [1, 1]} : vector<8x512xf32> to vector<8x128xf32>
    %249 = math.tanh %248 : vector<8x128xf32>
    %250 = vector.extract_strided_slice %235 {offsets = [0, 384], sizes = [8, 128], strides = [1, 1]} : vector<8x512xf32> to vector<8x128xf32>
    %251 = arith.negf %250 : vector<8x128xf32>
    %252 = math.exp %251 : vector<8x128xf32>
    %cst_73 = arith.constant 1.000000e+00 : f32
    %253 = vector.broadcast %cst_73 : f32 to vector<8x128xf32>
    %254 = arith.addf %253, %252 : vector<8x128xf32>
    %255 = arith.divf %253, %254 : vector<8x128xf32>
    %256 = arith.mulf %247, %222 : vector<8x128xf32>
    %257 = arith.mulf %241, %249 : vector<8x128xf32>
    %258 = arith.addf %256, %257 : vector<8x128xf32>
    %259 = math.tanh %258 : vector<8x128xf32>
    %260 = arith.mulf %255, %259 : vector<8x128xf32>
    %261 = arith.truncf %260 : vector<8x128xf32> to vector<8x128xbf16>
    %262 = arith.index_cast %229 : i32 to index
    %c0_74 = arith.constant 0 : index
    %263 = vector.load %arg7[%262, %c0_74] : memref<64x128xbf16, #tpu.memory_space<vmem>>, vector<8x128xbf16>
    tpu.vector_store %arg7[%262, %c0_74], %261 {strides = array<i32>} : memref<64x128xbf16, #tpu.memory_space<vmem>>, vector<8x128xbf16>,
    %c7_i32 = arith.constant 7 : i32
    %c8_i32_75 = arith.constant 8 : i32
    %264 = arith.muli %c7_i32, %c8_i32_75 : i32
    %265 = tpu.assume_multiple %264, 8 : i32
    %266 = arith.index_cast %265 : i32 to index
    %c0_76 = arith.constant 0 : index
    %267 = vector.load %arg12[%266, %c0_76] : memref<64x512xf32, #tpu.memory_space<vmem>>, vector<8x512xf32>
    %268 = arith.truncf %260 : vector<8x128xf32> to vector<8x128xbf16>
    %c0_77 = arith.constant 0 : index
    %c0_78 = arith.constant 0 : index
    %269 = vector.load %arg5[%c0_77, %c0_78] : memref<128x512xbf16, #tpu.memory_space<vmem>>, vector<128x512xbf16>
    %cst_79 = arith.constant dense<0.000000e+00> : vector<8x512xf32>
    %270 = tpu.matmul %268, %269, %cst_79 {dimension_numbers = #tpu.dot_dimension_numbers<[1], [0], [0], [1], [0, 0, 1, 1], [], []>} : vector<8x128xbf16>, vector<128x512xbf16>, vector<8x512xf32> -> vector<8x512xf32>
    %271 = arith.addf %267, %270 : vector<8x512xf32>
    %272 = vector.extract_strided_slice %271 {offsets = [0, 0], sizes = [8, 128], strides = [1, 1]} : vector<8x512xf32> to vector<8x128xf32>
    %273 = arith.negf %272 : vector<8x128xf32>
    %274 = math.exp %273 : vector<8x128xf32>
    %cst_80 = arith.constant 1.000000e+00 : f32
    %275 = vector.broadcast %cst_80 : f32 to vector<8x128xf32>
    %276 = arith.addf %275, %274 : vector<8x128xf32>
    %277 = arith.divf %275, %276 : vector<8x128xf32>
    %278 = vector.extract_strided_slice %271 {offsets = [0, 128], sizes = [8, 128], strides = [1, 1]} : vector<8x512xf32> to vector<8x128xf32>
    %279 = arith.negf %278 : vector<8x128xf32>
    %280 = math.exp %279 : vector<8x128xf32>
    %cst_81 = arith.constant 1.000000e+00 : f32
    %281 = vector.broadcast %cst_81 : f32 to vector<8x128xf32>
    %282 = arith.addf %281, %280 : vector<8x128xf32>
    %283 = arith.divf %281, %282 : vector<8x128xf32>
    %284 = vector.extract_strided_slice %271 {offsets = [0, 256], sizes = [8, 128], strides = [1, 1]} : vector<8x512xf32> to vector<8x128xf32>
    %285 = math.tanh %284 : vector<8x128xf32>
    %286 = vector.extract_strided_slice %271 {offsets = [0, 384], sizes = [8, 128], strides = [1, 1]} : vector<8x512xf32> to vector<8x128xf32>
    %287 = arith.negf %286 : vector<8x128xf32>
    %288 = math.exp %287 : vector<8x128xf32>
    %cst_82 = arith.constant 1.000000e+00 : f32
    %289 = vector.broadcast %cst_82 : f32 to vector<8x128xf32>
    %290 = arith.addf %289, %288 : vector<8x128xf32>
    %291 = arith.divf %289, %290 : vector<8x128xf32>
    %292 = arith.mulf %283, %258 : vector<8x128xf32>
    %293 = arith.mulf %277, %285 : vector<8x128xf32>
    %294 = arith.addf %292, %293 : vector<8x128xf32>
    %295 = math.tanh %294 : vector<8x128xf32>
    %296 = arith.mulf %291, %295 : vector<8x128xf32>
    %297 = arith.truncf %296 : vector<8x128xf32> to vector<8x128xbf16>
    %298 = arith.index_cast %265 : i32 to index
    %c0_83 = arith.constant 0 : index
    %299 = vector.load %arg7[%298, %c0_83] : memref<64x128xbf16, #tpu.memory_space<vmem>>, vector<8x128xbf16>
    tpu.vector_store %arg7[%298, %c0_83], %297 {strides = array<i32>} : memref<64x128xbf16, #tpu.memory_space<vmem>>, vector<8x128xbf16>,
    %c8_i32_84 = arith.constant 8 : i32
    %c0_85 = arith.constant 0 : index
    %c0_86 = arith.constant 0 : index
    %300 = vector.load %arg10[%c0_85, %c0_86] : memref<8x128xf32, #tpu.memory_space<vmem>>, vector<8x128xf32>
    tpu.vector_store %arg10[%c0_85, %c0_86], %296 {strides = array<i32>} : memref<8x128xf32, #tpu.memory_space<vmem>>, vector<8x128xf32>,
    %c0_87 = arith.constant 0 : index
    %c0_88 = arith.constant 0 : index
    %301 = vector.load %arg11[%c0_87, %c0_88] : memref<8x128xf32, #tpu.memory_space<vmem>>, vector<8x128xf32>
    tpu.vector_store %arg11[%c0_87, %c0_88], %294 {strides = array<i32>} : memref<8x128xf32, #tpu.memory_space<vmem>>, vector<8x128xf32>,
    %c0_i32_89 = arith.constant 0 : i32
    %302 = arith.cmpi eq, %arg0, %c0_i32_89 : i32
    %303 = arith.extui %302 : i1 to i32
    %c0_i32_90 = arith.constant 0 : i32
    %304 = arith.cmpi ne, %303, %c0_i32_90 : i32
    scf.if %304 {
      %c0_91 = arith.constant 0 : index
      %c0_92 = arith.constant 0 : index
      %305 = vector.load %arg10[%c0_91, %c0_92] : memref<8x128xf32, #tpu.memory_space<vmem>>, vector<8x128xf32>
      %c0_93 = arith.constant 0 : index
      %c0_94 = arith.constant 0 : index
      %306 = vector.load %arg8[%c0_93, %c0_94] : memref<8x128xf32, #tpu.memory_space<vmem>>, vector<8x128xf32>
      tpu.vector_store %arg8[%c0_93, %c0_94], %305 {strides = array<i32>} : memref<8x128xf32, #tpu.memory_space<vmem>>, vector<8x128xf32>,
      %c0_95 = arith.constant 0 : index
      %c0_96 = arith.constant 0 : index
      %307 = vector.load %arg11[%c0_95, %c0_96] : memref<8x128xf32, #tpu.memory_space<vmem>>, vector<8x128xf32>
      %c0_97 = arith.constant 0 : index
      %c0_98 = arith.constant 0 : index
      %308 = vector.load %arg9[%c0_97, %c0_98] : memref<8x128xf32, #tpu.memory_space<vmem>>, vector<8x128xf32>
      tpu.vector_store %arg9[%c0_97, %c0_98], %307 {strides = array<i32>} : memref<8x128xf32, #tpu.memory_space<vmem>>, vector<8x128xf32>,
    } else {
    }
    return
  }
  func.func @transform_0(%arg0: i32) -> (i32, i32) {
    %c0_i32 = arith.constant 0 : i32
    %c0_i32_0 = arith.constant 0 : i32
    %c0_i32_1 = arith.constant 0 : i32
    return %c0_i32, %c0_i32_0 : i32, i32
  }
  func.func @transform_1(%arg0: i32) -> (i32, i32) {
    %c0_i32 = arith.constant 0 : i32
    %c0_i32_0 = arith.constant 0 : i32
    %c0_i32_1 = arith.constant 0 : i32
    return %c0_i32, %c0_i32_0 : i32, i32
  }
  func.func @transform_2(%arg0: i32) -> (i32, i32) {
    %c0_i32 = arith.constant 0 : i32
    %c0_i32_0 = arith.constant 0 : i32
    return %arg0, %c0_i32 : i32, i32
  }
  func.func @transform_3(%arg0: i32) -> (i32, i32) {
    %c0_i32 = arith.constant 0 : i32
    %c0_i32_0 = arith.constant 0 : i32
    %c0_i32_1 = arith.constant 0 : i32
    return %c0_i32, %c0_i32_0 : i32, i32
  }
  func.func @transform_4(%arg0: i32) -> (i32, i32) {
    %c0_i32 = arith.constant 0 : i32
    %c0_i32_0 = arith.constant 0 : i32
    %c0_i32_1 = arith.constant 0 : i32
    return %c0_i32, %c0_i32_0 : i32, i32
  }
  func.func @transform_5(%arg0: i32) -> (i32, i32) {
    %c0_i32 = arith.constant 0 : i32
    %c0_i32_0 = arith.constant 0 : i32
    %c0_i32_1 = arith.constant 0 : i32
    return %c0_i32, %c0_i32_0 : i32, i32
  }
  func.func @transform_6(%arg0: i32) -> (i32, i32) {
    %c0_i32 = arith.constant 0 : i32
    %c0_i32_0 = arith.constant 0 : i32
    return %arg0, %c0_i32 : i32, i32
  }
  func.func @transform_7(%arg0: i32) -> (i32, i32) {
    %c0_i32 = arith.constant 0 : i32
    %c0_i32_0 = arith.constant 0 : i32
    %c0_i32_1 = arith.constant 0 : i32
    return %c0_i32, %c0_i32_0 : i32, i32
  }
  func.func @transform_8(%arg0: i32) -> (i32, i32) {
    %c0_i32 = arith.constant 0 : i32
    %c0_i32_0 = arith.constant 0 : i32
    %c0_i32_1 = arith.constant 0 : i32
    return %c0_i32, %c0_i32_0 : i32, i32
  }
}

</mosaic_0001>

<bundles_post_ra>
// kernel: tpu_custom_call.1
= control target key start
LH: loop header
LB: loop body
LE: loop exit
PB: predicated region body
PF: predicated region fallthrough
CT: control target
= control target key end

     0   :  { %14 = vsyncpa [#allocation6], 0  ;;  %s4615_s0 = inlined_call_operand.hbm [shape: f32[8,128], index: 0, kind: input, shape index: {}]   ;;  %s4616_s1 = inlined_call_operand.hbm [shape: f32[8,128], index: 1, kind: input, shape index: {}]   ;;  %s4617_s2 = inlined_call_operand.hbm [shape: bf16[64,128], index: 2, kind: input, shape index: {}]   ;;  %s4618_s3 = inlined_call_operand.hbm [shape: bf16[128,512], index: 3, kind: input, shape index: {}]   ;;  %s4619_s4 = inlined_call_operand.hbm [shape: bf16[128,512], index: 4, kind: input, shape index: {}]   ;;  %s4620_s5 = inlined_call_operand.vmem [shape: f32[1,512], index: 5, kind: input, shape index: {}]   ;;  %s4621_s6 = inlined_call_operand.hbm [shape: bf16[64,128], index: 6, kind: output, shape index: {0}]   ;;  %s4622_s7 = inlined_call_operand.hbm [shape: f32[8,128], index: 7, kind: output, shape index: {1}]   ;;  %s4623_s8 = inlined_call_operand.hbm [shape: f32[8,128], index: 8, kind: output, shape index: {2}]  }
   0x1   :  { %15 = vsyncpa [#allocation9], 0 }
   0x2   :  { %16 = vsyncpa [#allocation12], 0 }
   0x3   :  { %17 = vsyncpa [#allocation7], 0 }
   0x4   :  { %18 = vsyncpa [#allocation16], 0  ;;  %s3876_s27 = smov [#allocation8]   ;;  %s3877_s29 = smov [#allocation11]  }
   0x5   :  { %s35_s28 = sshll.u32 %s3876_s27, 4  ;;  %s56_s30 = sshll.u32 %s3877_s29, 4  ;;  %s36_s28 = int_to_ptr.vmem [resolvable:$true] %s35_s28  ;;  %s3934_s30 = int_to_ptr.vmem [resolvable:$true] %s56_s30 }
   0x6   :  { %s3690_s11 = scalar_lea.hbm %s4616_s1, 128 }
   0x7   :  { %p3691_p0 = scmp.ne.s32.totalorder %s4616_s1, %s3690_s11  ;;  %p3694_p1 = scmp.lt.u32.totalorder %s3690_s11, %s4616_s1 }
   0x9   :  { %p3696_p2 = pnand %p3694_p1, %p3691_p0 }
   0xb   :  { %3699 = shalt.err (!%p3696_p2)
}
   0xc   :  { %s3700_s16 = scalar_lea.vmem %s36_s28, 128  ;;  %p3705_p4 = scmp.lt.s32.totalorder %s36_s28, %s36_s28 }
   0xd   :  { %p3701_p3 = scmp.ne.s32.totalorder %s36_s28, %s3700_s16  ;;  %p3706_p5 = scmp.lt.s32.totalorder %s3700_s16, %s3700_s16 }
   0xf   :  { %p3707_p6 = por %p3706_p5, %p3705_p4 }
  0x11   :  { %p3708_p7 = pnand %p3707_p6, %p3701_p3 }
  0x13   :  { %3711 = shalt.err (!%p3708_p7)
}
  0x14   :  { %38 = dma.hbm_to_vmem [thread:$0]  %s4616_s1, 128, %s36_s28, [#allocation9]  }
  0x15   :  { %s3712_s21 = scalar_lea.hbm %s4618_s3, 4096 }
  0x16   :  { %p3713_p8 = scmp.ne.s32.totalorder %s4618_s3, %s3712_s21  ;;  %p3716_p9 = scmp.lt.u32.totalorder %s3712_s21, %s4618_s3 }
  0x18   :  { %p3718_p10 = pnand %p3716_p9, %p3713_p8 }
  0x1a   :  { %3721 = shalt.err (!%p3718_p10)
}
  0x1b   :  { %s3722_s26 = scalar_lea.vmem %s3934_s30, 4096  ;;  %p3727_p12 = scmp.lt.s32.totalorder %s3934_s30, %s3934_s30 }
  0x1c   :  { %p3723_p11 = scmp.ne.s32.totalorder %s3934_s30, %s3722_s26  ;;  %p3728_p13 = scmp.lt.s32.totalorder %s3722_s26, %s3722_s26 }
  0x1e   :  { %p3729_p0 = por %p3728_p13, %p3727_p12 }
  0x20   :  { %p3730_p1 = pnand %p3729_p0, %p3723_p11 }
  0x22   :  { %3733 = shalt.err (!%p3730_p1)
}
  0x23   :  { %s3878_s1 = smov 256   ;;  %s3879_s27 = smov 16  }
  0x24   :  { %62 = dma.hbm_to_vmem [thread:$0]  %s4618_s3, 4096, %s3934_s30, [#allocation12], %s3878_s1, %s3878_s1, %s3879_s27  }
  0x25   :  { %s3880_s9 = smov [#allocation5]   ;;  %s3881_s11 = smov [#allocation10]  }
  0x26   :  { %s25_s10 = sshll.u32 %s3880_s9, 4  ;;  %s44_s12 = sshll.u32 %s3881_s11, 4  ;;  %s26_s10 = int_to_ptr.vmem [resolvable:$true] %s25_s10  ;;  %s3968_s12 = int_to_ptr.vmem [resolvable:$true] %s44_s12 }
  0x27   :  { %s3734_s15 = scalar_lea.hbm %s4615_s0, 128 }
  0x28   :  { %p3735_p2 = scmp.ne.s32.totalorder %s4615_s0, %s3734_s15  ;;  %p3738_p3 = scmp.lt.u32.totalorder %s3734_s15, %s4615_s0 }
  0x2a   :  { %p3740_p4 = pnand %p3738_p3, %p3735_p2 }
  0x2c   :  { %3743 = shalt.err (!%p3740_p4)
}
  0x2d   :  { %s3744_s3 = scalar_lea.vmem %s26_s10, 128  ;;  %p3749_p6 = scmp.lt.s32.totalorder %s26_s10, %s26_s10 }
  0x2e   :  { %p3745_p5 = scmp.ne.s32.totalorder %s26_s10, %s3744_s3  ;;  %p3750_p7 = scmp.lt.s32.totalorder %s3744_s3, %s3744_s3 }
  0x30   :  { %p3751_p8 = por %p3750_p7, %p3749_p6 }
  0x32   :  { %p3752_p9 = pnand %p3751_p8, %p3745_p5 }
  0x34   :  { %3755 = shalt.err (!%p3752_p9)
}
  0x35   :  { %28 = dma.hbm_to_vmem [thread:$0]  %s4615_s0, 128, %s26_s10, [#allocation6]  }
  0x36   :  { %s3756_s23 = scalar_lea.hbm %s4617_s2, 512 }
  0x37   :  { %p3757_p10 = scmp.ne.s32.totalorder %s4617_s2, %s3756_s23  ;;  %p3760_p11 = scmp.lt.u32.totalorder %s3756_s23, %s4617_s2 }
  0x39   :  { %p3762_p12 = pnand %p3760_p11, %p3757_p10 }
  0x3b   :  { %3765 = shalt.err (!%p3762_p12)
}
  0x3c   :  { %s3766_s29 = scalar_lea.vmem %s3968_s12, 512  ;;  %p3771_p0 = scmp.lt.s32.totalorder %s3968_s12, %s3968_s12 }
  0x3d   :  { %p3767_p13 = scmp.ne.s32.totalorder %s3968_s12, %s3766_s29  ;;  %p3772_p1 = scmp.lt.s32.totalorder %s3766_s29, %s3766_s29 }
  0x3f   :  { %p3773_p2 = por %p3772_p1, %p3771_p0 }
  0x41   :  { %p3774_p3 = pnand %p3773_p2, %p3767_p13 }
  0x43   :  { %3777 = shalt.err (!%p3774_p3)
}
  0x44   :  { %s3882_s0 = smov 64   ;;  %s3883_s9 = smov 4  }
  0x45   :  { %50 = dma.hbm_to_vmem [thread:$0]  %s4617_s2, 512, %s3968_s12, [#allocation9], %s3882_s0, %s3882_s0, %s3883_s9  }
  0x46   :  { %s3884_s13 = smov [#allocation13]   ;;  %s3778_s17 = scalar_lea.hbm %s4619_s4, 4096 }
  0x47   :  { %s68_s14 = sshll.u32 %s3884_s13, 4  ;;  %p3779_p4 = scmp.ne.s32.totalorder %s4619_s4, %s3778_s17  ;;  %s69_s14 = int_to_ptr.vmem [resolvable:$true] %s68_s14 }
  0x48   :  { %p3782_p5 = scmp.lt.u32.totalorder %s3778_s17, %s4619_s4 }
  0x4a   :  { %p3784_p6 = pnand %p3782_p5, %p3779_p4 }
  0x4c   :  { %3787 = shalt.err (!%p3784_p6)
}
  0x4d   :  { %s3788_s20 = scalar_lea.vmem %s69_s14, 4096  ;;  %p3793_p8 = scmp.lt.s32.totalorder %s69_s14, %s69_s14 }
  0x4e   :  { %p3789_p7 = scmp.ne.s32.totalorder %s69_s14, %s3788_s20  ;;  %p3794_p9 = scmp.lt.s32.totalorder %s3788_s20, %s3788_s20 }
  0x50   :  { %p3795_p10 = por %p3794_p9, %p3793_p8 }
  0x52   :  { %p3796_p11 = pnand %p3795_p10, %p3789_p7 }
  0x54   :  { %3799 = shalt.err (!%p3796_p11)
}
  0x55   :  { %74 = dma.hbm_to_vmem [thread:$0]  %s4619_s4, 4096, %s69_s14, [#allocation12], %s3878_s1, %s3878_s1, %s3879_s27  }
  0x56   :  { %3866 = dma.done.wait [#allocation6], 128  }
  0x57   :  { %3867 = vsyncadd [#allocation6], 4294967168 }
  0x58   :  { %3868 = dma.done.wait [#allocation9], 640  }
  0x59   :  { %3869 = vsyncadd [#allocation9], 4294966656 }
  0x5a   :  { %3870 = dma.done.wait [#allocation12], 8192  }
  0x5b   :  { %3871 = vsyncadd [#allocation12], 4294959104  ;;  %v4624_v0 = vmov 0   ;;  %v3414_v1 = vld [vmem:[#allocation11 + $0x4] ss:$16 sps:$4 sm:$0xff]   ;;  %v3475_v44 = vld [vmem:[#allocation10 + $0x8] sm:$0xff]  }
  0x5c   :  { %379 = vmatprep.mubr.bf16.mxu0 %v4624_v0  ;;  %452 = vmatprep.mubr.bf16.mxu1 %v4624_v0  ;;  %v3416_v2 = vld [vmem:[#allocation11 + $0xc] ss:$16 sps:$4 sm:$0xff]   ;;  %v3418_v3 = vld [vmem:[#allocation11] ss:$16 sps:$4 sm:$0xff]   ;;  %v3419_v4 = vld [vmem:[#allocation11 + $0x8] ss:$16 sps:$4 sm:$0xff]  }
  0x5d   :  { %347 = vmatprep.subr.bf16.mxu0 %v3414_v1  ;;  %420 = vmatprep.subr.bf16.mxu1 %v3416_v2  ;;  %v3420_v5 = vld [vmem:[#allocation11 + $0x24] ss:$16 sps:$4 sm:$0xff]   ;;  %v3422_v6 = vld [vmem:[#allocation11 + $0x2c] ss:$16 sps:$4 sm:$0xff]   ;;  %v3424_v7 = vld [vmem:[#allocation11 + $0x20] ss:$16 sps:$4 sm:$0xff]  }
  0x5e   :  { %348 = vmatpush1.bf16.msra.mxu0 %v3418_v3  ;;  %421 = vmatpush1.bf16.msra.mxu1 %v3419_v4  ;;  %v3425_v8 = vld [vmem:[#allocation11 + $0x28] ss:$16 sps:$4 sm:$0xff]   ;;  %v3426_v9 = vld [vmem:[#allocation11 + $0x44] ss:$16 sps:$4 sm:$0xff]   ;;  %v3428_v10 = vld [vmem:[#allocation11 + $0x4c] ss:$16 sps:$4 sm:$0xff]  }
  0x5f   :  { %349 = vmatprep.subr.bf16.mxu0 %v3420_v5  ;;  %422 = vmatprep.subr.bf16.mxu1 %v3422_v6  ;;  %v3430_v11 = vld [vmem:[#allocation11 + $0x40] ss:$16 sps:$4 sm:$0xff]   ;;  %v3431_v12 = vld [vmem:[#allocation11 + $0x48] ss:$16 sps:$4 sm:$0xff]   ;;  %v3432_v13 = vld [vmem:[#allocation11 + $0x64] ss:$16 sps:$4 sm:$0xff]  }
  0x60   :  { %v3434_v14 = vld [vmem:[#allocation11 + $0x6c] ss:$16 sps:$4 sm:$0xff]   ;;  %v3436_v15 = vld [vmem:[#allocation11 + $0x60] ss:$16 sps:$4 sm:$0xff]   ;;  %v3437_v16 = vld [vmem:[#allocation11 + $0x68] ss:$16 sps:$4 sm:$0xff]  }
  0x61   :  { %v3438_v17 = vld [vmem:[#allocation11 + $0x84] ss:$16 sps:$4 sm:$0xff]   ;;  %v3440_v18 = vld [vmem:[#allocation11 + $0x8c] ss:$16 sps:$4 sm:$0xff]   ;;  %v3442_v19 = vld [vmem:[#allocation11 + $0x80] ss:$16 sps:$4 sm:$0xff]  }
  0x62   :  { %350 = vmatpush1.bf16.msra.mxu0 %v3424_v7  ;;  %423 = vmatpush1.bf16.msra.mxu1 %v3425_v8  ;;  %v3443_v20 = vld [vmem:[#allocation11 + $0x88] ss:$16 sps:$4 sm:$0xff]   ;;  %v3444_v21 = vld [vmem:[#allocation11 + $0xa4] ss:$16 sps:$4 sm:$0xff]   ;;  %v3446_v22 = vld [vmem:[#allocation11 + $0xac] ss:$16 sps:$4 sm:$0xff]   ;;  %v143_v8 = vlaneseq }
  0x63   :  { %351 = vmatprep.subr.bf16.mxu0 %v3426_v9  ;;  %424 = vmatprep.subr.bf16.mxu1 %v3428_v10  ;;  %v3448_v23 = vld [vmem:[#allocation11 + $0xa0] ss:$16 sps:$4 sm:$0xff]   ;;  %v3449_v24 = vld [vmem:[#allocation11 + $0xa8] ss:$16 sps:$4 sm:$0xff]   ;;  %v3450_v25 = vld [vmem:[#allocation11 + $0xc4] ss:$16 sps:$4 sm:$0xff]  }
  0x64   :  { %v3452_v26 = vld [vmem:[#allocation11 + $0xcc] ss:$16 sps:$4 sm:$0xff]   ;;  %v3454_v27 = vld [vmem:[#allocation11 + $0xc0] ss:$16 sps:$4 sm:$0xff]   ;;  %v3455_v28 = vld [vmem:[#allocation11 + $0xc8] ss:$16 sps:$4 sm:$0xff]  }
  0x65   :  { %v3456_v29 = vld [vmem:[#allocation11 + $0xe4] ss:$16 sps:$4 sm:$0xff]   ;;  %v3458_v30 = vld [vmem:[#allocation11 + $0xec] ss:$16 sps:$4 sm:$0xff]   ;;  %v3460_v31 = vld [vmem:[#allocation11 + $0xe0] ss:$16 sps:$4 sm:$0xff]  }
  0x66   :  { %352 = vmatpush1.bf16.msra.mxu0 %v3430_v11  ;;  %425 = vmatpush1.bf16.msra.mxu1 %v3431_v12  ;;  %v3461_v32 = vld [vmem:[#allocation11 + $0xe8] ss:$16 sps:$4 sm:$0xff]   ;;  %v4019_v33 = vld [vmem:[#allocation13 + $0x4] ss:$16 sps:$4 sm:$0xff]   ;;  %v4021_v34 = vld [vmem:[#allocation13 + $0xc] ss:$16 sps:$4 sm:$0xff]  }
  0x67   :  { %353 = vmatprep.subr.bf16.mxu0 %v3432_v13  ;;  %426 = vmatprep.subr.bf16.mxu1 %v3434_v14  ;;  %v3462_v35 = vld [vmem:[#allocation10] sm:$0xff]   ;;  %v4025_v37 = vld [vmem:[#allocation13 + $0x8] ss:$16 sps:$4 sm:$0xff]   ;;  %v4031_v39 = vld [vmem:[#allocation13 + $0x2c] ss:$16 sps:$4 sm:$0xff]   ;;  %v144_v9 = vshrl.u32 %v143_v8, 7 }
  0x68   :  { %v4023_v36 = vld [vmem:[#allocation13] ss:$16 sps:$4 sm:$0xff]   ;;  %v4029_v38 = vld [vmem:[#allocation13 + $0x24] ss:$16 sps:$4 sm:$0xff]   ;;  %v4037_v41 = vld [vmem:[#allocation13 + $0x28] ss:$16 sps:$4 sm:$0xff]  }
  0x69   :  { %v4033_v40 = vld [vmem:[#allocation13 + $0x20] ss:$16 sps:$4 sm:$0xff]   ;;  %v4041_v42 = vld [vmem:[#allocation13 + $0x44] ss:$16 sps:$4 sm:$0xff]   ;;  %v4043_v43 = vld [vmem:[#allocation13 + $0x4c] ss:$16 sps:$4 sm:$0xff]  }
  0x6a   :  { %354 = vmatpush1.bf16.msra.mxu0 %v3436_v15  ;;  %427 = vmatpush1.bf16.msra.mxu1 %v3437_v16  ;;  %v4047_v45 = vld [vmem:[#allocation13 + $0x40] ss:$16 sps:$4 sm:$0xff]   ;;  %v4049_v46 = vld [vmem:[#allocation13 + $0x48] ss:$16 sps:$4 sm:$0xff]   ;;  %v4053_v47 = vld [vmem:[#allocation13 + $0x64] ss:$16 sps:$4 sm:$0xff]  }
  0x6b   :  { %355 = vmatprep.subr.bf16.mxu0 %v3438_v17  ;;  %428 = vmatprep.subr.bf16.mxu1 %v3440_v18  ;;  %v4057_v48 = vld [vmem:[#allocation13 + $0x6c] ss:$16 sps:$4 sm:$0xff]   ;;  %v4059_v49 = vld [vmem:[#allocation13 + $0x60] ss:$16 sps:$4 sm:$0xff]   ;;  %v4061_v50 = vld [vmem:[#allocation13 + $0x68] ss:$16 sps:$4 sm:$0xff]  }
  0x6c   :  { %v4065_v51 = vld [vmem:[#allocation13 + $0x84] ss:$16 sps:$4 sm:$0xff]   ;;  %v4069_v52 = vld [vmem:[#allocation13 + $0x8c] ss:$16 sps:$4 sm:$0xff]   ;;  %v4073_v54 = vld [vmem:[#allocation13 + $0x80] ss:$16 sps:$4 sm:$0xff]  }
  0x6d   :  { %v3488_v53 = vld [vmem:[#allocation10 + $0x10] sm:$0xff]   ;;  %v4075_v55 = vld [vmem:[#allocation13 + $0x88] ss:$16 sps:$4 sm:$0xff]   ;;  %v4079_v57 = vld [vmem:[#allocation13 + $0xac] ss:$16 sps:$4 sm:$0xff]   ;;  %v153_v10 = vsub.s32 2, %v144_v9 }
  0x6e   :  { %356 = vmatpush1.bf16.msra.mxu0 %v3442_v19  ;;  %429 = vmatpush1.bf16.msra.mxu1 %v3443_v20  ;;  %v4077_v56 = vld [vmem:[#allocation13 + $0xa4] ss:$16 sps:$4 sm:$0xff]   ;;  %v4085_v58 = vld [vmem:[#allocation13 + $0xa0] ss:$16 sps:$4 sm:$0xff]   ;;  %v4087_v59 = vld [vmem:[#allocation13 + $0xa8] ss:$16 sps:$4 sm:$0xff]  }
  0x6f   :  { %357 = vmatprep.subr.bf16.mxu0 %v3444_v21  ;;  %430 = vmatprep.subr.bf16.mxu1 %v3446_v22  ;;  %v4089_v60 = vld [vmem:[#allocation13 + $0xc4] ss:$16 sps:$4 sm:$0xff]   ;;  %v4091_v61 = vld [vmem:[#allocation13 + $0xcc] ss:$16 sps:$4 sm:$0xff]   ;;  %v4099_v63 = vld [vmem:[#allocation13 + $0xc0] ss:$16 sps:$4 sm:$0xff]  }
  0x70   :  { %v3501_v62 = vld [vmem:[#allocation10 + $0x18] sm:$0xff]   ;;  %v4103_v2 = vld [vmem:[#allocation13 + $0xe4] ss:$16 sps:$4 sm:$0xff]   ;;  %v4113_v4 = vld [vmem:[#allocation13 + $0xe0] ss:$16 sps:$4 sm:$0xff]   ;;  %v157_v11 = vsub.s32 3, %v144_v9 }
  0x71   :  { %v4101_v1 = vld [vmem:[#allocation13 + $0xc8] ss:$16 sps:$4 sm:$0xff]   ;;  %v4105_v3 = vld [vmem:[#allocation13 + $0xec] ss:$16 sps:$4 sm:$0xff]   ;;  %v97_v6 = vld [vmem:[#allocation5] sm:$0xff]  ;;  %v145_v12 = vsub.s32 0, %v144_v9 }
  0x72   :  { %358 = vmatpush1.bf16.msra.mxu0 %v3448_v23  ;;  %431 = vmatpush1.bf16.msra.mxu1 %v3449_v24  ;;  %v4115_v5 = vld [vmem:[#allocation13 + $0xe8] ss:$16 sps:$4 sm:$0xff]   ;;  %v534_v7 = vpack.c.bf16 %v97_v6, %v97_v6  ;;  %v141_v13 = vld [vmem:[%s4620_s5] sm:$0xf]  ;;  %v149_v14 = vsub.s32 1, %v144_v9  ;;  %s3886_s5 = smov [#allocation15]  }
  0x73   :  { %359 = vmatprep.subr.bf16.mxu0 %v3450_v25  ;;  %432 = vmatprep.subr.bf16.mxu1 %v3452_v26  ;;  %v4162_v15 = vrot.slane %v141_v13, %v153_v10  ;;  %v4168_v18 = vrot.slane %v141_v13, %v157_v11  ;;  %v146_v19 = vrot.slane %v141_v13, %v145_v12  ;;  %s3050_s27 = sshll.u32 %s3886_s5, 4  ;;  %s3887_s21 = smov [#allocation17]   ;;  %s3051_s27 = int_to_ptr.vmem [resolvable:$true] %s3050_s27 }
  0x74   :  { %v150_v22 = vrot.slane %v141_v13, %v149_v14  ;;  %s3060_s22 = sshll.u32 %s3887_s21, 4  ;;  %s3888_s23 = smov [#allocation14]   ;;  %s4562_s22 = int_to_ptr.vmem [resolvable:$true] %s3060_s22 }
  0x75   :  { %s3037_s24 = sshll.u32 %s3888_s23, 4  ;;  %s3800_s25 = scalar_lea.vmem %s3051_s27, 128  ;;  %s4564_s24 = int_to_ptr.vmem [resolvable:$true] %s3037_s24 }
  0x76   :  { %360 = vmatpush1.bf16.msra.mxu0 %v3454_v27  ;;  %433 = vmatpush1.bf16.msra.mxu1 %v3455_v28  ;;  %p3801_p12 = scmp.ne.s32.totalorder %s3051_s27, %s3800_s25  ;;  %p3805_p13 = scmp.lt.s32.totalorder %s3051_s27, %s3051_s27 }
  0x77   :  { %361 = vmatprep.subr.bf16.mxu0 %v3456_v29  ;;  %434 = vmatprep.subr.bf16.mxu1 %v3458_v30  ;;  %p3806_p0 = scmp.lt.s32.totalorder %s3800_s25, %s3800_s25 }
  0x79   :  { %p3807_p1 = por %p3806_p0, %p3805_p13 }
  0x7a   :  { %362 = vmatpush1.bf16.msra.mxu0 %v3460_v31  ;;  %435 = vmatpush1.bf16.msra.mxu1 %v3461_v32 }
  0x7b   :  { %727 = vmatprep.subr.bf16.mxu0 %v4019_v33  ;;  %768 = vmatprep.subr.bf16.mxu1 %v4021_v34  ;;  %p3808_p2 = pnand %p3807_p1, %p3801_p12 }
  0x7d   :  { %380 = vmatmul.mubr.bf16.vlgmr.msra.gmra.mrb[0].mxu0 %v3462_v35  ;;  %453 = vmatmul.mubr.bf16.vlgmr.msra.gmra.mrb[0].mxu1 %v3462_v35 }
  0x7e   :  { %728 = vmatpush1.bf16.msra.mxu0 %v4023_v36  ;;  %769 = vmatpush1.bf16.msra.mxu1 %v4025_v37 }
  0x7f   :  { %729 = vmatprep.subr.bf16.mxu0 %v4029_v38  ;;  %770 = vmatprep.subr.bf16.mxu1 %v4031_v39 }
  0x80   :  { %389 = vmatprep.mubr.bf16.mxu0 %v4624_v0  ;;  %462 = vmatprep.mubr.bf16.mxu1 %v4624_v0 }
  0x82   :  { %730 = vmatpush1.bf16.msra.mxu0 %v4033_v40  ;;  %771 = vmatpush1.bf16.msra.mxu1 %v4037_v41 }
  0x83   :  { %731 = vmatprep.subr.bf16.mxu0 %v4041_v42  ;;  %772 = vmatprep.subr.bf16.mxu1 %v4043_v43 }
  0x85   :  { %390 = vmatmul.mubr.bf16.gmra.mrb[4].mxu0 %v3475_v44  ;;  %463 = vmatmul.mubr.bf16.gmra.mrb[4].mxu1 %v3475_v44 }
  0x86   :  { %732 = vmatpush1.bf16.msra.mxu0 %v4047_v45  ;;  %773 = vmatpush1.bf16.msra.mxu1 %v4049_v46 }
  0x87   :  { %733 = vmatprep.subr.bf16.mxu0 %v4053_v47  ;;  %774 = vmatprep.subr.bf16.mxu1 %v4057_v48 }
  0x88   :  { %399 = vmatprep.mubr.bf16.mxu0 %v4624_v0  ;;  %472 = vmatprep.mubr.bf16.mxu1 %v4624_v0 }
  0x8a   :  { %734 = vmatpush1.bf16.msra.mxu0 %v4059_v49  ;;  %775 = vmatpush1.bf16.msra.mxu1 %v4061_v50 }
  0x8b   :  { %735 = vmatprep.subr.bf16.mxu0 %v4065_v51  ;;  %776 = vmatprep.subr.bf16.mxu1 %v4069_v52 }
  0x8d   :  { %400 = vmatmul.mubr.bf16.gmra.mrb[8].mxu0 %v3488_v53  ;;  %473 = vmatmul.mubr.bf16.gmra.mrb[8].mxu1 %v3488_v53 }
  0x8e   :  { %736 = vmatpush1.bf16.msra.mxu0 %v4073_v54  ;;  %777 = vmatpush1.bf16.msra.mxu1 %v4075_v55 }
  0x8f   :  { %737 = vmatprep.subr.bf16.mxu0 %v4077_v56  ;;  %778 = vmatprep.subr.bf16.mxu1 %v4079_v57 }
  0x90   :  { %409 = vmatprep.mubr.bf16.mxu0 %v4624_v0  ;;  %482 = vmatprep.mubr.bf16.mxu1 %v4624_v0 }
  0x92   :  { %738 = vmatpush1.bf16.msra.mxu0 %v4085_v58  ;;  %779 = vmatpush1.bf16.msra.mxu1 %v4087_v59 }
  0x93   :  { %739 = vmatprep.subr.bf16.mxu0 %v4089_v60  ;;  %780 = vmatprep.subr.bf16.mxu1 %v4091_v61 }
  0x95   :  { %410 = vmatmul.mubr.bf16.gmra.mrb[12].mxu0 %v3501_v62  ;;  %483 = vmatmul.mubr.bf16.gmra.mrb[12].mxu1 %v3501_v62 }
  0x96   :  { %740 = vmatpush1.bf16.msra.mxu0 %v4099_v63  ;;  %781 = vmatpush1.bf16.msra.mxu1 %v4101_v1 }
  0x97   :  { %741 = vmatprep.subr.bf16.mxu0 %v4103_v2  ;;  %782 = vmatprep.subr.bf16.mxu1 %v4105_v3 }
  0x98   :  { %759 = vmatprep.mubr.bf16.mxu0 %v4624_v0  ;;  %800 = vmatprep.mubr.bf16.mxu1 %v4624_v0 }
  0x9a   :  { %742 = vmatpush1.bf16.msra.mxu0 %v4113_v4  ;;  %783 = vmatpush1.bf16.msra.mxu1 %v4115_v5 }
  0x9b   :  { %1038 = vmatprep.subr.bf16.mxu0 %v4019_v33  ;;  %1079 = vmatprep.subr.bf16.mxu1 %v4021_v34 }
  0x9d   :  { %760 = vmatmul.mubr.bf16.vlgmr.msra.gmra.mrb[16].mxu0 %v534_v7  ;;  %801 = vmatmul.mubr.bf16.vlgmr.msra.gmra.mrb[16].mxu1 %v534_v7 }
  0x9e   :  { %1039 = vmatpush1.bf16.msra.mxu0 %v4023_v36  ;;  %1080 = vmatpush1.bf16.msra.mxu1 %v4025_v37 }
  0x9f   :  { %1040 = vmatprep.subr.bf16.mxu0 %v4029_v38  ;;  %1081 = vmatprep.subr.bf16.mxu1 %v4031_v39 }
  0xa0   :  { %1070 = vmatprep.mubr.bf16.mxu0 %v4624_v0  ;;  %1111 = vmatprep.mubr.bf16.mxu1 %v4624_v0 }
  0xa2   :  { %1041 = vmatpush1.bf16.msra.mxu0 %v4033_v40  ;;  %1082 = vmatpush1.bf16.msra.mxu1 %v4037_v41 }
  0xa3   :  { %1042 = vmatprep.subr.bf16.mxu0 %v4041_v42  ;;  %1083 = vmatprep.subr.bf16.mxu1 %v4043_v43 }
  0xa6   :  { %1043 = vmatpush1.bf16.msra.mxu0 %v4047_v45  ;;  %1084 = vmatpush1.bf16.msra.mxu1 %v4049_v46 }
  0xa7   :  { %1044 = vmatprep.subr.bf16.mxu0 %v4053_v47  ;;  %1085 = vmatprep.subr.bf16.mxu1 %v4057_v48 }
  0xaa   :  { %1045 = vmatpush1.bf16.msra.mxu0 %v4059_v49  ;;  %1086 = vmatpush1.bf16.msra.mxu1 %v4061_v50 }
  0xab   :  { %1046 = vmatprep.subr.bf16.mxu0 %v4065_v51  ;;  %1087 = vmatprep.subr.bf16.mxu1 %v4069_v52 }
  0xae   :  { %1047 = vmatpush1.bf16.msra.mxu0 %v4073_v54  ;;  %1088 = vmatpush1.bf16.msra.mxu1 %v4075_v55 }
  0xaf   :  { %1048 = vmatprep.subr.bf16.mxu0 %v4077_v56  ;;  %1089 = vmatprep.subr.bf16.mxu1 %v4079_v57 }
  0xb2   :  { %1049 = vmatpush1.bf16.msra.mxu0 %v4085_v58  ;;  %1090 = vmatpush1.bf16.msra.mxu1 %v4087_v59 }
  0xb3   :  { %1050 = vmatprep.subr.bf16.mxu0 %v4089_v60  ;;  %1091 = vmatprep.subr.bf16.mxu1 %v4091_v61 }
  0xb6   :  { %1051 = vmatpush1.bf16.msra.mxu0 %v4099_v63  ;;  %1092 = vmatpush1.bf16.msra.mxu1 %v4101_v1 }
  0xb7   :  { %1052 = vmatprep.subr.bf16.mxu0 %v4103_v2  ;;  %1093 = vmatprep.subr.bf16.mxu1 %v4105_v3 }
  0xba   :  { %1053 = vmatpush1.bf16.msra.mxu0 %v4113_v4  ;;  %1094 = vmatpush1.bf16.msra.mxu1 %v4115_v5 }
  0xbb   :  { %1350 = vmatprep.subr.bf16.mxu0 %v4019_v33  ;;  %1391 = vmatprep.subr.bf16.mxu1 %v4021_v34 }
 0x150   :  { %v4164_v16 = vpop.f32.mrb[0].mxu0  ;;  %v4166_v17 = vpop.f32.mrb[0].mxu1 }
 0x151   :  { %v383_v20 = vpop.f32.mrb[1].mxu0  ;;  %v456_v21 = vpop.f32.mrb[1].mxu1 }
 0x152   :  { %v385_v23 = vpop.f32.mrb[2].mxu0  ;;  %v458_v24 = vpop.f32.mrb[2].mxu1 }
 0x153   :  { %v4170_v25 = vadd.f32 %v385_v23, %v146_v19  ;;  %v387_v26 = vpop.f32.mrb[3].mxu0  ;;  %v4173_v27 = vadd.f32 %v458_v24, %v4162_v15  ;;  %v460_v28 = vpop.f32.mrb[3].mxu1 }
 0x154   :  { %v4175_v29 = vadd.f32 %v387_v26, %v150_v22  ;;  %v4178_v30 = vadd.f32 %v460_v28, %v4168_v18 }
 0x158   :  { %v391_v31 = vpop.f32.mrb[4].mxu0  ;;  %v464_v32 = vpop.f32.mrb[4].mxu1 }
 0x159   :  { %v4180_v35 = vadd.f32 %v391_v31, %v146_v19  ;;  %v393_v44 = vpop.f32.mrb[5].mxu0  ;;  %v4183_v53 = vadd.f32 %v464_v32, %v4162_v15  ;;  %v466_v62 = vpop.f32.mrb[5].mxu1 }
 0x15a   :  { %v4185_v6 = vadd.f32 %v393_v44, %v150_v22  ;;  %v395_v7 = vpop.f32.mrb[6].mxu0  ;;  %v4188_v8 = vadd.f32 %v466_v62, %v4168_v18  ;;  %v468_v9 = vpop.f32.mrb[6].mxu1 }
 0x15b   :  { %v4190_v10 = vadd.f32 %v395_v7, %v146_v19  ;;  %v397_v11 = vpop.f32.mrb[7].mxu0  ;;  %v4193_v12 = vadd.f32 %v468_v9, %v4162_v15  ;;  %v470_v13 = vpop.f32.mrb[7].mxu1 }
 0x15c   :  { %4626 = vst [vmem:[#allocation23_spill] sm:$0xff] %v4188_v8  ;;  %v4195_v14 = vadd.f32 %v397_v11, %v150_v22  ;;  %v4198_v23 = vadd.f32 %v470_v13, %v4168_v18 }
 0x15d   :  { %4627 = vst [vmem:[#allocation24_spill] sm:$0xff] %v4190_v10  ;;  %4628 = vst [vmem:[#allocation25_spill] sm:$0xff] %v4193_v12 }
 0x15e   :  { %4629 = vst [vmem:[#allocation26_spill] sm:$0xff] %v4195_v14  ;;  %4630 = vst [vmem:[#allocation27_spill] sm:$0xff] %v4198_v23 }
 0x160   :  { %v401_v24 = vpop.f32.mrb[8].mxu0  ;;  %v474_v26 = vpop.f32.mrb[8].mxu1 }
 0x161   :  { %v4200_v28 = vadd.f32 %v401_v24, %v146_v19  ;;  %v403_v31 = vpop.f32.mrb[9].mxu0  ;;  %v4203_v32 = vadd.f32 %v474_v26, %v4162_v15  ;;  %v476_v44 = vpop.f32.mrb[9].mxu1 }
 0x162   :  { %v4205_v62 = vadd.f32 %v403_v31, %v150_v22  ;;  %v405_v7 = vpop.f32.mrb[10].mxu0  ;;  %v4208_v9 = vadd.f32 %v476_v44, %v4168_v18  ;;  %v478_v11 = vpop.f32.mrb[10].mxu1 }
 0x163   :  { %4631 = vst [vmem:[#allocation28_spill] sm:$0xff] %v4200_v28  ;;  %4632 = vst [vmem:[#allocation29_spill] sm:$0xff] %v4203_v32  ;;  %v4210_v0 = vadd.f32 %v405_v7, %v146_v19  ;;  %v407_v13 = vpop.f32.mrb[11].mxu0  ;;  %v4213_v23 = vadd.f32 %v478_v11, %v4162_v15  ;;  %v480_v24 = vpop.f32.mrb[11].mxu1 }
 0x164   :  { %4633 = vst [vmem:[#allocation30_spill] sm:$0xff] %v4205_v62  ;;  %4634 = vst [vmem:[#allocation31_spill] sm:$0xff] %v4208_v9  ;;  %v4215_v28 = vadd.f32 %v407_v13, %v150_v22  ;;  %v4218_v26 = vadd.f32 %v480_v24, %v4168_v18 }
 0x165   :  { %4635 = vst [vmem:[#allocation32_spill] sm:$0xff] %v4210_v0  ;;  %4636 = vst [vmem:[#allocation33_spill] sm:$0xff] %v4213_v23 }
 0x166   :  { %4637 = vst [vmem:[#allocation34_spill] sm:$0xff] %v4215_v28  ;;  %4638 = vst [vmem:[#allocation35_spill] sm:$0xff] %v4218_v26 }
 0x168   :  { %v411_v32 = vpop.f32.mrb[12].mxu0  ;;  %v484_v31 = vpop.f32.mrb[12].mxu1 }
 0x169   :  { %v4220_v62 = vadd.f32 %v411_v32, %v146_v19  ;;  %v413_v14 = vpop.f32.mrb[13].mxu0  ;;  %v4223_v44 = vadd.f32 %v484_v31, %v4162_v15  ;;  %v486_v7 = vpop.f32.mrb[13].mxu1 }
 0x16a   :  { %v4225_v0 = vadd.f32 %v413_v14, %v150_v22  ;;  %v415_v9 = vpop.f32.mrb[14].mxu0  ;;  %v4228_v11 = vadd.f32 %v486_v7, %v4168_v18  ;;  %v488_v13 = vpop.f32.mrb[14].mxu1  ;;  %v382_v14 = vadd.f32 %v4164_v16, %v146_v19  ;;  %v384_v7 = vadd.f32 %v383_v20, %v150_v22 }
 0x16b   :  { %4639 = vst [vmem:[#allocation36_spill] sm:$0xff] %v4220_v62  ;;  %4640 = vst [vmem:[#allocation37_spill] sm:$0xff] %v4223_v44  ;;  %v4230_v28 = vadd.f32 %v415_v9, %v146_v19  ;;  %v417_v24 = vpop.f32.mrb[15].mxu0  ;;  %v4233_v26 = vadd.f32 %v488_v13, %v4162_v15  ;;  %v490_v32 = vpop.f32.mrb[15].mxu1 }
 0x16c   :  { %4641 = vst [vmem:[#allocation38_spill] sm:$0xff] %v4225_v0  ;;  %4642 = vst [vmem:[#allocation39_spill] sm:$0xff] %v4228_v11  ;;  %v4235_v62 = vadd.f32 %v417_v24, %v150_v22  ;;  %v4238_v31 = vadd.f32 %v490_v32, %v4168_v18  ;;  %v455_v0 = vadd.f32 %v4166_v17, %v4162_v15  ;;  %v99_v22 = vld [vmem:[#allocation8] sm:$0xff] }
 0x16d   :  { %4643 = vst [vmem:[#allocation40_spill] sm:$0xff] %v4230_v28  ;;  %4644 = vst [vmem:[#allocation41_spill] sm:$0xff] %v4233_v26  ;;  %v457_v11 = vadd.f32 %v456_v21, %v4168_v18 }
 0x16e   :  { %4645 = vst [vmem:[#allocation42_spill] sm:$0xff] %v4235_v62  ;;  %4646 = vst [vmem:[#allocation43_spill] sm:$0xff] %v4238_v31 }
 0x170   :  { %v761_v9 = vpop.f32.mrb[16].mxu0  ;;  %v802_v28 = vpop.f32.mrb[16].mxu1 }
 0x171   :  { %v809_v44 = vadd.f32 %v761_v9, %v382_v14  ;;  %v811_v23 = vadd.f32 %v802_v28, %v455_v0  ;;  %v763_v13 = vpop.f32.mrb[17].mxu0  ;;  %v804_v26 = vpop.f32.mrb[17].mxu1  ;;  %v4647_v14 = vmov 0  }
 0x172   :  { %v810_v12 = vadd.f32 %v763_v13, %v384_v7  ;;  %v812_v24 = vadd.f32 %v804_v26, %v457_v11  ;;  %v765_v62 = vpop.f32.mrb[18].mxu0  ;;  %v806_v10 = vpop.f32.mrb[18].mxu1 }
 0x173   :  { %v3153_v32 = vmul.f32 -1.442695, %v809_v44  ;;  %v766_v31 = vpop.f32.mrb[19].mxu0  ;;  %v807_v8 = vpop.f32.mrb[19].mxu1 }
 0x174   :  { %v3154_v16 = vmul.f32 -1.442695, %v810_v12  ;;  %v3155_v15 = vmul.f32 -1.442695, %v812_v24 }
 0x175   :  { %3562 = vpow2.f32 %v3153_v32 }
 0x176   :  { %3564 = vpow2.f32 %v3154_v16 }
 0x177   :  { %3566 = vpow2.f32 %v3155_v15 }
 0x178   :  { %3568 = vtanh.f32 %v811_v23 }
 0x17f   :  { %v3563_v17 = vpop.eup %3562 }
 0x180   :  { %v3565_v19 = vpop.eup %3564  ;;  %v816_v18 = vadd.f32 1.0, %v3563_v17 }
 0x181   :  { %v822_v20 = vadd.f32 1.0, %v3565_v19  ;;  %v3567_v0 = vpop.eup %3566 }
 0x182   :  { %3570 = vrcp.f32 %v816_v18  ;;  %v3569_v21 = vpop.eup %3568  ;;  %v829_v26 = vadd.f32 1.0, %v3567_v0 }
 0x183   :  { %3572 = vrcp.f32 %v822_v20 }
 0x184   :  { %3574 = vrcp.f32 %v829_v26 }
 0x18c   :  { %v3571_v28 = vpop.eup %3570 }
 0x18d   :  { %v3573_v10 = vpop.eup %3572  ;;  %v833_v62 = vmul.f32 %v3571_v28, %v3569_v21 }
 0x18e   :  { %v832_v8 = vmul.f32 %v3573_v10, %v99_v22  ;;  %v3575_v44 = vpop.eup %3574 }
 0x190   :  { %v4244_v12 = vadd.f32 %v833_v62, %v832_v8 }
 0x192   :  { %3576 = vtanh.f32 %v4244_v12 }
 0x19c   :  { %v3577_v11 = vpop.eup %3576 }
 0x19d   :  { %v836_v31 = vmul.f32 %v3577_v11, %v3575_v44 }
 0x19f   :  { %v837_v23 = vpack.c.bf16 %v836_v31, %v836_v31 }
 0x1a1   :  { %838 = vst [vmem:[#allocation14] sm:$0xf] %v837_v23  ;;  %1071 = vmatmul.mubr.bf16.vlgmr.msra.gmra.mrb[20].mxu0 %v837_v23  ;;  %1112 = vmatmul.mubr.bf16.vlgmr.msra.gmra.mrb[20].mxu1 %v837_v23 }
 0x1a2   :  { %1351 = vmatpush1.bf16.msra.mxu0 %v4023_v36  ;;  %1392 = vmatpush1.bf16.msra.mxu1 %v4025_v37 }
 0x1a3   :  { %1352 = vmatprep.subr.bf16.mxu0 %v4029_v38  ;;  %1393 = vmatprep.subr.bf16.mxu1 %v4031_v39 }
 0x1a4   :  { %1382 = vmatprep.mubr.bf16.mxu0 %v4647_v14  ;;  %1423 = vmatprep.mubr.bf16.mxu1 %v4647_v14 }
 0x1a6   :  { %1353 = vmatpush1.bf16.msra.mxu0 %v4033_v40  ;;  %1394 = vmatpush1.bf16.msra.mxu1 %v4037_v41 }
 0x1a7   :  { %1354 = vmatprep.subr.bf16.mxu0 %v4041_v42  ;;  %1395 = vmatprep.subr.bf16.mxu1 %v4043_v43 }
 0x1aa   :  { %1355 = vmatpush1.bf16.msra.mxu0 %v4047_v45  ;;  %1396 = vmatpush1.bf16.msra.mxu1 %v4049_v46 }
 0x1ab   :  { %1356 = vmatprep.subr.bf16.mxu0 %v4053_v47  ;;  %1397 = vmatprep.subr.bf16.mxu1 %v4057_v48 }
 0x1ae   :  { %1357 = vmatpush1.bf16.msra.mxu0 %v4059_v49  ;;  %1398 = vmatpush1.bf16.msra.mxu1 %v4061_v50 }
 0x1af   :  { %1358 = vmatprep.subr.bf16.mxu0 %v4065_v51  ;;  %1399 = vmatprep.subr.bf16.mxu1 %v4069_v52 }
 0x1b2   :  { %1359 = vmatpush1.bf16.msra.mxu0 %v4073_v54  ;;  %1400 = vmatpush1.bf16.msra.mxu1 %v4075_v55 }
 0x1b3   :  { %1360 = vmatprep.subr.bf16.mxu0 %v4077_v56  ;;  %1401 = vmatprep.subr.bf16.mxu1 %v4079_v57 }
 0x1b6   :  { %1361 = vmatpush1.bf16.msra.mxu0 %v4085_v58  ;;  %1402 = vmatpush1.bf16.msra.mxu1 %v4087_v59 }
 0x1b7   :  { %1362 = vmatprep.subr.bf16.mxu0 %v4089_v60  ;;  %1403 = vmatprep.subr.bf16.mxu1 %v4091_v61 }
 0x1ba   :  { %1363 = vmatpush1.bf16.msra.mxu0 %v4099_v63  ;;  %1404 = vmatpush1.bf16.msra.mxu1 %v4101_v1 }
 0x1bb   :  { %1364 = vmatprep.subr.bf16.mxu0 %v4103_v2  ;;  %1405 = vmatprep.subr.bf16.mxu1 %v4105_v3 }
 0x1be   :  { %1365 = vmatpush1.bf16.msra.mxu0 %v4113_v4  ;;  %1406 = vmatpush1.bf16.msra.mxu1 %v4115_v5 }
 0x1bf   :  { %1662 = vmatprep.subr.bf16.mxu0 %v4019_v33  ;;  %1703 = vmatprep.subr.bf16.mxu1 %v4021_v34 }
 0x274   :  { %v1072_v7 = vpop.f32.mrb[20].mxu0  ;;  %v1113_v9 = vpop.f32.mrb[20].mxu1 }
 0x275   :  { %v1120_v13 = vadd.f32 %v1072_v7, %v4170_v25  ;;  %v1122_v24 = vadd.f32 %v1113_v9, %v4173_v27  ;;  %v1074_v32 = vpop.f32.mrb[21].mxu0  ;;  %v1115_v16 = vpop.f32.mrb[21].mxu1 }
 0x276   :  { %v1121_v15 = vadd.f32 %v1074_v32, %v4175_v29  ;;  %v1123_v17 = vadd.f32 %v1115_v16, %v4178_v30  ;;  %v1076_v19 = vpop.f32.mrb[22].mxu0  ;;  %v1117_v18 = vpop.f32.mrb[22].mxu1  ;;  %v4343_v32 = vld [vmem:[#allocation13 + $0x24] ss:$16 sps:$4 sm:$0xff]   ;;  %v4345_v16 = vld [vmem:[#allocation13 + $0x2c] ss:$16 sps:$4 sm:$0xff]  }
 0x277   :  { %v3188_v20 = vmul.f32 -1.442695, %v1120_v13  ;;  %v1077_v0 = vpop.f32.mrb[23].mxu0  ;;  %v1118_v21 = vpop.f32.mrb[23].mxu1  ;;  %v4335_v13 = vld [vmem:[#allocation13] ss:$16 sps:$4 sm:$0xff]  }
 0x278   :  { %v3189_v33 = vmul.f32 -1.442695, %v1121_v15  ;;  %v3190_v34 = vmul.f32 -1.442695, %v1123_v17  ;;  %v4347_v15 = vld [vmem:[#allocation13 + $0x20] ss:$16 sps:$4 sm:$0xff]  }
 0x279   :  { %3578 = vpow2.f32 %v3188_v20  ;;  %v4349_v17 = vld [vmem:[#allocation13 + $0x28] ss:$16 sps:$4 sm:$0xff]   ;;  %v4355_v19 = vld [vmem:[#allocation13 + $0x44] ss:$16 sps:$4 sm:$0xff]   ;;  %v4357_v18 = vld [vmem:[#allocation13 + $0x4c] ss:$16 sps:$4 sm:$0xff]  }
 0x27a   :  { %3580 = vpow2.f32 %v3189_v33  ;;  %v4359_v20 = vld [vmem:[#allocation13 + $0x40] ss:$16 sps:$4 sm:$0xff]   ;;  %v4361_v0 = vld [vmem:[#allocation13 + $0x48] ss:$16 sps:$4 sm:$0xff]   ;;  %v4367_v21 = vld [vmem:[#allocation13 + $0x64] ss:$16 sps:$4 sm:$0xff]  }
 0x27b   :  { %3582 = vpow2.f32 %v3190_v34  ;;  %v4369_v33 = vld [vmem:[#allocation13 + $0x6c] ss:$16 sps:$4 sm:$0xff]   ;;  %v4371_v34 = vld [vmem:[#allocation13 + $0x60] ss:$16 sps:$4 sm:$0xff]  }
 0x27c   :  { %3584 = vtanh.f32 %v1122_v24  ;;  %v4337_v24 = vld [vmem:[#allocation13 + $0x8] ss:$16 sps:$4 sm:$0xff]  }
 0x283   :  { %v3579_v22 = vpop.eup %3578 }
 0x284   :  { %v3581_v28 = vpop.eup %3580  ;;  %v1127_v25 = vadd.f32 1.0, %v3579_v22  ;;  %v4373_v22 = vld [vmem:[#allocation13 + $0x68] ss:$16 sps:$4 sm:$0xff]  }
 0x285   :  { %v1133_v27 = vadd.f32 1.0, %v3581_v28  ;;  %v3583_v29 = vpop.eup %3582  ;;  %v4379_v28 = vld [vmem:[#allocation13 + $0x80] ss:$16 sps:$4 sm:$0xff]  }
 0x286   :  { %3586 = vrcp.f32 %v1127_v25  ;;  %v3585_v10 = vpop.eup %3584  ;;  %v1140_v8 = vadd.f32 1.0, %v3583_v29  ;;  %v4381_v25 = vld [vmem:[#allocation13 + $0x84] ss:$16 sps:$4 sm:$0xff]   ;;  %v4385_v29 = vld [vmem:[#allocation13 + $0x8c] ss:$16 sps:$4 sm:$0xff]  }
 0x287   :  { %3588 = vrcp.f32 %v1133_v27  ;;  %v4383_v27 = vld [vmem:[#allocation13 + $0x88] ss:$16 sps:$4 sm:$0xff]  }
 0x288   :  { %3590 = vrcp.f32 %v1140_v8  ;;  %v4400_v8 = vld [vmem:[#allocation13 + $0xc4] ss:$16 sps:$4 sm:$0xff]  }
 0x290   :  { %v3587_v30 = vpop.eup %3586 }
 0x291   :  { %v3589_v62 = vpop.eup %3588  ;;  %v1144_v26 = vmul.f32 %v3587_v30, %v3585_v10  ;;  %v4387_v10 = vld [vmem:[#allocation13 + $0xa4] ss:$16 sps:$4 sm:$0xff]   ;;  %v4390_v30 = vld [vmem:[#allocation13 + $0xac] ss:$16 sps:$4 sm:$0xff]  }
 0x292   :  { %v1143_v44 = vmul.f32 %v3589_v62, %v4244_v12  ;;  %v3591_v31 = vpop.eup %3590  ;;  %v4333_v12 = vld [vmem:[#allocation13 + $0xc] ss:$16 sps:$4 sm:$0xff]   ;;  %v4394_v62 = vld [vmem:[#allocation13 + $0xa0] ss:$16 sps:$4 sm:$0xff]  }
 0x294   :  { %v4286_v11 = vadd.f32 %v1144_v26, %v1143_v44  ;;  %v4398_v26 = vld [vmem:[#allocation13 + $0xa8] ss:$16 sps:$4 sm:$0xff]   ;;  %v4403_v44 = vld [vmem:[#allocation13 + $0xcc] ss:$16 sps:$4 sm:$0xff]  }
 0x296   :  { %3592 = vtanh.f32 %v4286_v11 }
 0x2a0   :  { %v3593_v23 = vpop.eup %3592 }
 0x2a1   :  { %v1147_v7 = vmul.f32 %v3593_v23, %v3591_v31  ;;  %v4410_v31 = vld [vmem:[#allocation13 + $0xc8] ss:$16 sps:$4 sm:$0xff]   ;;  %v4412_v23 = vld [vmem:[#allocation13 + $0xe4] ss:$16 sps:$4 sm:$0xff]  }
 0x2a3   :  { %v1148_v9 = vpack.c.bf16 %v1147_v7, %v1147_v7  ;;  %v4415_v7 = vld [vmem:[#allocation13 + $0xec] ss:$16 sps:$4 sm:$0xff]  }
 0x2a5   :  { %1150 = vst [vmem:[#allocation14 + $0x4] sm:$0xf] %v1148_v9  ;;  %1383 = vmatmul.mubr.bf16.vlgmr.msra.gmra.mrb[24].mxu0 %v1148_v9  ;;  %1424 = vmatmul.mubr.bf16.vlgmr.msra.gmra.mrb[24].mxu1 %v1148_v9  ;;  %v4418_v9 = vld [vmem:[#allocation13 + $0xe0] ss:$16 sps:$4 sm:$0xff]  }
 0x2a6   :  { %1663 = vmatpush1.bf16.msra.mxu0 %v4023_v36  ;;  %1704 = vmatpush1.bf16.msra.mxu1 %v4025_v37 }
 0x2a7   :  { %1664 = vmatprep.subr.bf16.mxu0 %v4029_v38  ;;  %1705 = vmatprep.subr.bf16.mxu1 %v4031_v39 }
 0x2a8   :  { %1694 = vmatprep.mubr.bf16.mxu0 %v4647_v14  ;;  %1735 = vmatprep.mubr.bf16.mxu1 %v4647_v14 }
 0x2aa   :  { %1665 = vmatpush1.bf16.msra.mxu0 %v4033_v40  ;;  %1706 = vmatpush1.bf16.msra.mxu1 %v4037_v41 }
 0x2ab   :  { %1666 = vmatprep.subr.bf16.mxu0 %v4041_v42  ;;  %1707 = vmatprep.subr.bf16.mxu1 %v4043_v43  ;;  %v4648_v43 = vld [vmem:[#allocation23_spill] sm:$0xff] }
 0x2ae   :  { %1667 = vmatpush1.bf16.msra.mxu0 %v4047_v45  ;;  %1708 = vmatpush1.bf16.msra.mxu1 %v4049_v46 }
 0x2af   :  { %1668 = vmatprep.subr.bf16.mxu0 %v4053_v47  ;;  %1709 = vmatprep.subr.bf16.mxu1 %v4057_v48 }
 0x2b2   :  { %1669 = vmatpush1.bf16.msra.mxu0 %v4059_v49  ;;  %1710 = vmatpush1.bf16.msra.mxu1 %v4061_v50 }
 0x2b3   :  { %1670 = vmatprep.subr.bf16.mxu0 %v4065_v51  ;;  %1711 = vmatprep.subr.bf16.mxu1 %v4069_v52 }
 0x2b6   :  { %1671 = vmatpush1.bf16.msra.mxu0 %v4073_v54  ;;  %1712 = vmatpush1.bf16.msra.mxu1 %v4075_v55 }
 0x2b7   :  { %1672 = vmatprep.subr.bf16.mxu0 %v4077_v56  ;;  %1713 = vmatprep.subr.bf16.mxu1 %v4079_v57 }
 0x2ba   :  { %1673 = vmatpush1.bf16.msra.mxu0 %v4085_v58  ;;  %1714 = vmatpush1.bf16.msra.mxu1 %v4087_v59 }
 0x2bb   :  { %1674 = vmatprep.subr.bf16.mxu0 %v4089_v60  ;;  %1715 = vmatprep.subr.bf16.mxu1 %v4091_v61 }
 0x2be   :  { %1675 = vmatpush1.bf16.msra.mxu0 %v4099_v63  ;;  %1716 = vmatpush1.bf16.msra.mxu1 %v4101_v1 }
 0x2bf   :  { %1676 = vmatprep.subr.bf16.mxu0 %v4103_v2  ;;  %1717 = vmatprep.subr.bf16.mxu1 %v4105_v3 }
 0x2c2   :  { %1677 = vmatpush1.bf16.msra.mxu0 %v4113_v4  ;;  %1718 = vmatpush1.bf16.msra.mxu1 %v4115_v5 }
 0x2c3   :  { %2015 = vmatprep.subr.bf16.mxu1 %v4333_v12 }
 0x378   :  { %v1384_v36 = vpop.f32.mrb[24].mxu0  ;;  %v1425_v37 = vpop.f32.mrb[24].mxu1 }
 0x379   :  { %v1432_v38 = vadd.f32 %v1384_v36, %v4180_v35  ;;  %v1434_v39 = vadd.f32 %v1425_v37, %v4183_v53  ;;  %v1386_v40 = vpop.f32.mrb[25].mxu0  ;;  %v1427_v41 = vpop.f32.mrb[25].mxu1  ;;  %v4422_v36 = vld [vmem:[#allocation13 + $0xe8] ss:$16 sps:$4 sm:$0xff]  }
 0x37a   :  { %v1433_v42 = vadd.f32 %v1386_v40, %v4185_v6  ;;  %v1435_v45 = vadd.f32 %v1427_v41, %v4648_v43  ;;  %v1388_v46 = vpop.f32.mrb[26].mxu0  ;;  %v1429_v47 = vpop.f32.mrb[26].mxu1  ;;  %v4331_v6 = vld [vmem:[#allocation13 + $0x4] ss:$16 sps:$4 sm:$0xff]  }
 0x37b   :  { %v3223_v48 = vmul.f32 -1.442695, %v1432_v38  ;;  %v1389_v49 = vpop.f32.mrb[27].mxu0  ;;  %v1430_v50 = vpop.f32.mrb[27].mxu1  ;;  %1974 = vmatprep.subr.bf16.mxu0 %v4331_v6  ;;  %v4650_v41 = vld [vmem:[#allocation25_spill] sm:$0xff]  ;;  %v4651_v46 = vld [vmem:[#allocation26_spill] sm:$0xff] }
 0x37c   :  { %v3224_v51 = vmul.f32 -1.442695, %v1433_v42  ;;  %v3225_v52 = vmul.f32 -1.442695, %v1435_v45 }
 0x37d   :  { %3594 = vpow2.f32 %v3223_v48  ;;  %v4652_v48 = vld [vmem:[#allocation27_spill] sm:$0xff] }
 0x37e   :  { %3596 = vpow2.f32 %v3224_v51 }
 0x37f   :  { %3598 = vpow2.f32 %v3225_v52 }
 0x380   :  { %3600 = vtanh.f32 %v1434_v39  ;;  %v4649_v39 = vld [vmem:[#allocation24_spill] sm:$0xff] }
 0x387   :  { %v3595_v54 = vpop.eup %3594 }
 0x388   :  { %v3597_v55 = vpop.eup %3596  ;;  %v1439_v56 = vadd.f32 1.0, %v3595_v54 }
 0x389   :  { %v1445_v57 = vadd.f32 1.0, %v3597_v55  ;;  %v3599_v58 = vpop.eup %3598 }
 0x38a   :  { %3602 = vrcp.f32 %v1439_v56  ;;  %v3601_v59 = vpop.eup %3600  ;;  %v1452_v1 = vadd.f32 1.0, %v3599_v58 }
 0x38b   :  { %3604 = vrcp.f32 %v1445_v57 }
 0x38c   :  { %3606 = vrcp.f32 %v1452_v1 }
 0x394   :  { %v3603_v60 = vpop.eup %3602 }
 0x395   :  { %v3605_v61 = vpop.eup %3604  ;;  %v1456_v63 = vmul.f32 %v3603_v60, %v3601_v59 }
 0x396   :  { %v1455_v2 = vmul.f32 %v3605_v61, %v4286_v11  ;;  %v3607_v4 = vpop.eup %3606  ;;  %v4406_v11 = vld [vmem:[#allocation13 + $0xc0] ss:$16 sps:$4 sm:$0xff]  }
 0x398   :  { %v4326_v3 = vadd.f32 %v1456_v63, %v1455_v2 }
 0x39a   :  { %3608 = vtanh.f32 %v4326_v3 }
 0x3a4   :  { %v3609_v5 = vpop.eup %3608 }
 0x3a5   :  { %v1459_v35 = vmul.f32 %v3609_v5, %v3607_v4 }
 0x3a7   :  { %v1460_v53 = vpack.c.bf16 %v1459_v35, %v1459_v35 }
 0x3a9   :  { %1462 = vst [vmem:[#allocation14 + $0x8] sm:$0xf] %v1460_v53  ;;  %1695 = vmatmul.mubr.bf16.vlgmr.msra.gmra.mrb[28].mxu0 %v1460_v53  ;;  %1736 = vmatmul.mubr.bf16.vlgmr.msra.gmra.mrb[28].mxu1 %v1460_v53 }
 0x3aa   :  { %2006 = vmatprep.mubr.bf16.mxu0 %v4647_v14  ;;  %2047 = vmatprep.mubr.bf16.mxu1 %v4647_v14 }
 0x3ab   :  { %1975 = vmatpush1.bf16.msra.mxu0 %v4335_v13  ;;  %2016 = vmatpush1.bf16.msra.mxu1 %v4337_v24 }
 0x3ac   :  { %1976 = vmatprep.subr.bf16.mxu0 %v4343_v32  ;;  %2017 = vmatprep.subr.bf16.mxu1 %v4345_v16 }
 0x3af   :  { %1977 = vmatpush1.bf16.msra.mxu0 %v4347_v15  ;;  %2018 = vmatpush1.bf16.msra.mxu1 %v4349_v17 }
 0x3b0   :  { %1978 = vmatprep.subr.bf16.mxu0 %v4355_v19  ;;  %2019 = vmatprep.subr.bf16.mxu1 %v4357_v18 }
 0x3b3   :  { %1979 = vmatpush1.bf16.msra.mxu0 %v4359_v20  ;;  %2020 = vmatpush1.bf16.msra.mxu1 %v4361_v0 }
 0x3b4   :  { %1980 = vmatprep.subr.bf16.mxu0 %v4367_v21  ;;  %2021 = vmatprep.subr.bf16.mxu1 %v4369_v33 }
 0x3b7   :  { %1981 = vmatpush1.bf16.msra.mxu0 %v4371_v34  ;;  %2022 = vmatpush1.bf16.msra.mxu1 %v4373_v22 }
 0x3b8   :  { %1982 = vmatprep.subr.bf16.mxu0 %v4381_v25  ;;  %2023 = vmatprep.subr.bf16.mxu1 %v4385_v29 }
 0x3bb   :  { %1983 = vmatpush1.bf16.msra.mxu0 %v4379_v28  ;;  %2024 = vmatpush1.bf16.msra.mxu1 %v4383_v27 }
 0x3bc   :  { %1984 = vmatprep.subr.bf16.mxu0 %v4387_v10  ;;  %2025 = vmatprep.subr.bf16.mxu1 %v4390_v30 }
 0x3bf   :  { %1985 = vmatpush1.bf16.msra.mxu0 %v4394_v62  ;;  %2026 = vmatpush1.bf16.msra.mxu1 %v4398_v26 }
 0x3c0   :  { %1986 = vmatprep.subr.bf16.mxu0 %v4400_v8  ;;  %2027 = vmatprep.subr.bf16.mxu1 %v4403_v44 }
 0x3c3   :  { %1987 = vmatpush1.bf16.msra.mxu0 %v4406_v11  ;;  %2028 = vmatpush1.bf16.msra.mxu1 %v4410_v31 }
 0x3c4   :  { %1988 = vmatprep.subr.bf16.mxu0 %v4412_v23  ;;  %2029 = vmatprep.subr.bf16.mxu1 %v4415_v7 }
 0x3c7   :  { %1989 = vmatpush1.bf16.msra.mxu0 %v4418_v9  ;;  %2030 = vmatpush1.bf16.msra.mxu1 %v4422_v36 }
 0x3c8   :  { %2286 = vmatprep.subr.bf16.mxu0 %v4331_v6  ;;  %2327 = vmatprep.subr.bf16.mxu1 %v4333_v12 }
 0x47c   :  { %v1696_v37 = vpop.f32.mrb[28].mxu0  ;;  %v1737_v38 = vpop.f32.mrb[28].mxu1 }
 0x47d   :  { %v1744_v40 = vadd.f32 %v1696_v37, %v4649_v39  ;;  %v1746_v42 = vadd.f32 %v1737_v38, %v4650_v41  ;;  %v1698_v43 = vpop.f32.mrb[29].mxu0  ;;  %v1739_v45 = vpop.f32.mrb[29].mxu1 }
 0x47e   :  { %v1745_v47 = vadd.f32 %v1698_v43, %v4651_v46  ;;  %v1747_v49 = vadd.f32 %v1739_v45, %v4652_v48  ;;  %v1700_v50 = vpop.f32.mrb[30].mxu0  ;;  %v1741_v51 = vpop.f32.mrb[30].mxu1  ;;  %v4653_v43 = vld [vmem:[#allocation28_spill] sm:$0xff]  ;;  %v4654_v46 = vld [vmem:[#allocation29_spill] sm:$0xff] }
 0x47f   :  { %v3258_v52 = vmul.f32 -1.442695, %v1744_v40  ;;  %v1701_v54 = vpop.f32.mrb[31].mxu0  ;;  %v1742_v55 = vpop.f32.mrb[31].mxu1  ;;  %v4655_v50 = vld [vmem:[#allocation30_spill] sm:$0xff] }
 0x480   :  { %v3259_v56 = vmul.f32 -1.442695, %v1745_v47  ;;  %v3260_v57 = vmul.f32 -1.442695, %v1747_v49 }
 0x481   :  { %3610 = vpow2.f32 %v3258_v52  ;;  %v4656_v52 = vld [vmem:[#allocation31_spill] sm:$0xff] }
 0x482   :  { %3612 = vpow2.f32 %v3259_v56 }
 0x483   :  { %3614 = vpow2.f32 %v3260_v57 }
 0x484   :  { %3616 = vtanh.f32 %v1746_v42 }
 0x48b   :  { %v3611_v58 = vpop.eup %3610 }
 0x48c   :  { %v3613_v59 = vpop.eup %3612  ;;  %v1751_v60 = vadd.f32 1.0, %v3611_v58 }
 0x48d   :  { %v1757_v61 = vadd.f32 1.0, %v3613_v59  ;;  %v3615_v63 = vpop.eup %3614 }
 0x48e   :  { %3618 = vrcp.f32 %v1751_v60  ;;  %v3617_v1 = vpop.eup %3616  ;;  %v1764_v35 = vadd.f32 1.0, %v3615_v63 }
 0x48f   :  { %3620 = vrcp.f32 %v1757_v61 }
 0x490   :  { %3622 = vrcp.f32 %v1764_v35 }
 0x498   :  { %v3619_v2 = vpop.eup %3618 }
 0x499   :  { %v3621_v4 = vpop.eup %3620  ;;  %v1768_v5 = vmul.f32 %v3619_v2, %v3617_v1 }
 0x49a   :  { %v1767_v53 = vmul.f32 %v3621_v4, %v4326_v3  ;;  %v3623_v38 = vpop.eup %3622 }
 0x49c   :  { %v4434_v37 = vadd.f32 %v1768_v5, %v1767_v53 }
 0x49e   :  { %3624 = vtanh.f32 %v4434_v37 }
 0x4a8   :  { %v3625_v39 = vpop.eup %3624 }
 0x4a9   :  { %v1771_v40 = vmul.f32 %v3625_v39, %v3623_v38 }
 0x4ab   :  { %v1772_v41 = vpack.c.bf16 %v1771_v40, %v1771_v40 }
 0x4ad   :  { %1774 = vst [vmem:[#allocation14 + $0xc] sm:$0xf] %v1772_v41  ;;  %2007 = vmatmul.mubr.bf16.vlgmr.msra.gmra.mrb[32].mxu0 %v1772_v41  ;;  %2048 = vmatmul.mubr.bf16.vlgmr.msra.gmra.mrb[32].mxu1 %v1772_v41 }
 0x4ae   :  { %2287 = vmatpush1.bf16.msra.mxu0 %v4335_v13  ;;  %2328 = vmatpush1.bf16.msra.mxu1 %v4337_v24 }
 0x4af   :  { %2288 = vmatprep.subr.bf16.mxu0 %v4343_v32  ;;  %2329 = vmatprep.subr.bf16.mxu1 %v4345_v16 }
 0x4b0   :  { %2318 = vmatprep.mubr.bf16.mxu0 %v4647_v14  ;;  %2359 = vmatprep.mubr.bf16.mxu1 %v4647_v14 }
 0x4b2   :  { %2289 = vmatpush1.bf16.msra.mxu0 %v4347_v15  ;;  %2330 = vmatpush1.bf16.msra.mxu1 %v4349_v17 }
 0x4b3   :  { %2290 = vmatprep.subr.bf16.mxu0 %v4355_v19  ;;  %2331 = vmatprep.subr.bf16.mxu1 %v4357_v18 }
 0x4b6   :  { %2291 = vmatpush1.bf16.msra.mxu0 %v4359_v20  ;;  %2332 = vmatpush1.bf16.msra.mxu1 %v4361_v0 }
 0x4b7   :  { %2292 = vmatprep.subr.bf16.mxu0 %v4367_v21  ;;  %2333 = vmatprep.subr.bf16.mxu1 %v4369_v33 }
 0x4ba   :  { %2293 = vmatpush1.bf16.msra.mxu0 %v4371_v34  ;;  %2334 = vmatpush1.bf16.msra.mxu1 %v4373_v22 }
 0x4bb   :  { %2294 = vmatprep.subr.bf16.mxu0 %v4381_v25  ;;  %2335 = vmatprep.subr.bf16.mxu1 %v4385_v29 }
 0x4be   :  { %2295 = vmatpush1.bf16.msra.mxu0 %v4379_v28  ;;  %2336 = vmatpush1.bf16.msra.mxu1 %v4383_v27 }
 0x4bf   :  { %2296 = vmatprep.subr.bf16.mxu0 %v4387_v10  ;;  %2337 = vmatprep.subr.bf16.mxu1 %v4390_v30 }
 0x4c2   :  { %2297 = vmatpush1.bf16.msra.mxu0 %v4394_v62  ;;  %2338 = vmatpush1.bf16.msra.mxu1 %v4398_v26 }
 0x4c3   :  { %2298 = vmatprep.subr.bf16.mxu0 %v4400_v8  ;;  %2339 = vmatprep.subr.bf16.mxu1 %v4403_v44 }
 0x4c6   :  { %2299 = vmatpush1.bf16.msra.mxu0 %v4406_v11  ;;  %2340 = vmatpush1.bf16.msra.mxu1 %v4410_v31 }
 0x4c7   :  { %2300 = vmatprep.subr.bf16.mxu0 %v4412_v23  ;;  %2341 = vmatprep.subr.bf16.mxu1 %v4415_v7 }
 0x4ca   :  { %2301 = vmatpush1.bf16.msra.mxu0 %v4418_v9  ;;  %2342 = vmatpush1.bf16.msra.mxu1 %v4422_v36 }
 0x4cb   :  { %2598 = vmatprep.subr.bf16.mxu0 %v4331_v6  ;;  %2639 = vmatprep.subr.bf16.mxu1 %v4333_v12 }
 0x580   :  { %v2008_v3 = vpop.f32.mrb[32].mxu0  ;;  %v2049_v42 = vpop.f32.mrb[32].mxu1 }
 0x581   :  { %v2056_v45 = vadd.f32 %v2008_v3, %v4653_v43  ;;  %v2058_v47 = vadd.f32 %v2049_v42, %v4654_v46  ;;  %v2010_v48 = vpop.f32.mrb[33].mxu0  ;;  %v2051_v49 = vpop.f32.mrb[33].mxu1 }
 0x582   :  { %v2057_v51 = vadd.f32 %v2010_v48, %v4655_v50  ;;  %v2059_v54 = vadd.f32 %v2051_v49, %v4656_v52  ;;  %v2012_v55 = vpop.f32.mrb[34].mxu0  ;;  %v2053_v56 = vpop.f32.mrb[34].mxu1  ;;  %v4657_v48 = vld [vmem:[#allocation32_spill] sm:$0xff]  ;;  %v4658_v50 = vld [vmem:[#allocation33_spill] sm:$0xff] }
 0x583   :  { %v3293_v57 = vmul.f32 -1.442695, %v2056_v45  ;;  %v2013_v58 = vpop.f32.mrb[35].mxu0  ;;  %v2054_v59 = vpop.f32.mrb[35].mxu1  ;;  %v4659_v55 = vld [vmem:[#allocation34_spill] sm:$0xff] }
 0x584   :  { %v3294_v60 = vmul.f32 -1.442695, %v2057_v51  ;;  %v3295_v61 = vmul.f32 -1.442695, %v2059_v54 }
 0x585   :  { %3626 = vpow2.f32 %v3293_v57  ;;  %v4660_v57 = vld [vmem:[#allocation35_spill] sm:$0xff] }
 0x586   :  { %3628 = vpow2.f32 %v3294_v60 }
 0x587   :  { %3630 = vpow2.f32 %v3295_v61 }
 0x588   :  { %3632 = vtanh.f32 %v2058_v47 }
 0x58f   :  { %v3627_v63 = vpop.eup %3626 }
 0x590   :  { %v3629_v1 = vpop.eup %3628  ;;  %v2063_v2 = vadd.f32 1.0, %v3627_v63 }
 0x591   :  { %v2069_v4 = vadd.f32 1.0, %v3629_v1  ;;  %v3631_v5 = vpop.eup %3630 }
 0x592   :  { %3634 = vrcp.f32 %v2063_v2  ;;  %v3633_v35 = vpop.eup %3632  ;;  %v2076_v40 = vadd.f32 1.0, %v3631_v5 }
 0x593   :  { %3636 = vrcp.f32 %v2069_v4 }
 0x594   :  { %3638 = vrcp.f32 %v2076_v40 }
 0x59c   :  { %v3635_v53 = vpop.eup %3634 }
 0x59d   :  { %v3637_v38 = vpop.eup %3636  ;;  %v2080_v39 = vmul.f32 %v3635_v53, %v3633_v35 }
 0x59e   :  { %v2079_v41 = vmul.f32 %v3637_v38, %v4434_v37  ;;  %v3639_v42 = vpop.eup %3638 }
 0x5a0   :  { %v4476_v3 = vadd.f32 %v2080_v39, %v2079_v41 }
 0x5a2   :  { %3640 = vtanh.f32 %v4476_v3 }
 0x5ac   :  { %v3641_v43 = vpop.eup %3640 }
 0x5ad   :  { %v2083_v45 = vmul.f32 %v3641_v43, %v3639_v42 }
 0x5af   :  { %v2084_v46 = vpack.c.bf16 %v2083_v45, %v2083_v45 }
 0x5b1   :  { %2086 = vst [vmem:[#allocation14 + $0x10] sm:$0xf] %v2084_v46  ;;  %2319 = vmatmul.mubr.bf16.vlgmr.msra.gmra.mrb[36].mxu0 %v2084_v46  ;;  %2360 = vmatmul.mubr.bf16.vlgmr.msra.gmra.mrb[36].mxu1 %v2084_v46 }
 0x5b2   :  { %2599 = vmatpush1.bf16.msra.mxu0 %v4335_v13  ;;  %2640 = vmatpush1.bf16.msra.mxu1 %v4337_v24 }
 0x5b3   :  { %2600 = vmatprep.subr.bf16.mxu0 %v4343_v32  ;;  %2641 = vmatprep.subr.bf16.mxu1 %v4345_v16 }
 0x5b4   :  { %2630 = vmatprep.mubr.bf16.mxu0 %v4647_v14  ;;  %2671 = vmatprep.mubr.bf16.mxu1 %v4647_v14 }
 0x5b6   :  { %2601 = vmatpush1.bf16.msra.mxu0 %v4347_v15  ;;  %2642 = vmatpush1.bf16.msra.mxu1 %v4349_v17 }
 0x5b7   :  { %2602 = vmatprep.subr.bf16.mxu0 %v4355_v19  ;;  %2643 = vmatprep.subr.bf16.mxu1 %v4357_v18 }
 0x5ba   :  { %2603 = vmatpush1.bf16.msra.mxu0 %v4359_v20  ;;  %2644 = vmatpush1.bf16.msra.mxu1 %v4361_v0 }
 0x5bb   :  { %2604 = vmatprep.subr.bf16.mxu0 %v4367_v21  ;;  %2645 = vmatprep.subr.bf16.mxu1 %v4369_v33 }
 0x5be   :  { %2605 = vmatpush1.bf16.msra.mxu0 %v4371_v34  ;;  %2646 = vmatpush1.bf16.msra.mxu1 %v4373_v22 }
 0x5bf   :  { %2606 = vmatprep.subr.bf16.mxu0 %v4381_v25  ;;  %2647 = vmatprep.subr.bf16.mxu1 %v4385_v29 }
 0x5c2   :  { %2607 = vmatpush1.bf16.msra.mxu0 %v4379_v28  ;;  %2648 = vmatpush1.bf16.msra.mxu1 %v4383_v27 }
 0x5c3   :  { %2608 = vmatprep.subr.bf16.mxu0 %v4387_v10  ;;  %2649 = vmatprep.subr.bf16.mxu1 %v4390_v30 }
 0x5c6   :  { %2609 = vmatpush1.bf16.msra.mxu0 %v4394_v62  ;;  %2650 = vmatpush1.bf16.msra.mxu1 %v4398_v26 }
 0x5c7   :  { %2610 = vmatprep.subr.bf16.mxu0 %v4400_v8  ;;  %2651 = vmatprep.subr.bf16.mxu1 %v4403_v44 }
 0x5ca   :  { %2611 = vmatpush1.bf16.msra.mxu0 %v4406_v11  ;;  %2652 = vmatpush1.bf16.msra.mxu1 %v4410_v31 }
 0x5cb   :  { %2612 = vmatprep.subr.bf16.mxu0 %v4412_v23  ;;  %2653 = vmatprep.subr.bf16.mxu1 %v4415_v7 }
 0x5ce   :  { %2613 = vmatpush1.bf16.msra.mxu0 %v4418_v9  ;;  %2654 = vmatpush1.bf16.msra.mxu1 %v4422_v36 }
 0x5cf   :  { %2910 = vmatprep.subr.bf16.mxu0 %v4331_v6  ;;  %2951 = vmatprep.subr.bf16.mxu1 %v4333_v12 }
 0x684   :  { %v2320_v37 = vpop.f32.mrb[36].mxu0  ;;  %v2361_v47 = vpop.f32.mrb[36].mxu1 }
 0x685   :  { %v2368_v49 = vadd.f32 %v2320_v37, %v4657_v48  ;;  %v2370_v51 = vadd.f32 %v2361_v47, %v4658_v50  ;;  %v2322_v52 = vpop.f32.mrb[37].mxu0  ;;  %v2363_v54 = vpop.f32.mrb[37].mxu1 }
 0x686   :  { %v2369_v56 = vadd.f32 %v2322_v52, %v4659_v55  ;;  %v2371_v58 = vadd.f32 %v2363_v54, %v4660_v57  ;;  %v2324_v59 = vpop.f32.mrb[38].mxu0  ;;  %v2365_v60 = vpop.f32.mrb[38].mxu1  ;;  %v4665_v55 = vld [vmem:[#allocation40_spill] sm:$0xff]  ;;  %v4666_v57 = vld [vmem:[#allocation41_spill] sm:$0xff] }
 0x687   :  { %v3328_v61 = vmul.f32 -1.442695, %v2368_v49  ;;  %v2325_v63 = vpop.f32.mrb[39].mxu0  ;;  %v2366_v1 = vpop.f32.mrb[39].mxu1 }
 0x688   :  { %v3329_v6 = vmul.f32 -1.442695, %v2369_v56  ;;  %v3330_v12 = vmul.f32 -1.442695, %v2371_v58  ;;  %v4668_v1 = vld [vmem:[#allocation43_spill] sm:$0xff] }
 0x689   :  { %3642 = vpow2.f32 %v3328_v61  ;;  %v4667_v61 = vld [vmem:[#allocation42_spill] sm:$0xff] }
 0x68a   :  { %3644 = vpow2.f32 %v3329_v6 }
 0x68b   :  { %3646 = vpow2.f32 %v3330_v12 }
 0x68c   :  { %3648 = vtanh.f32 %v2370_v51 }
 0x693   :  { %v3643_v2 = vpop.eup %3642 }
 0x694   :  { %v3645_v4 = vpop.eup %3644  ;;  %v2375_v5 = vadd.f32 1.0, %v3643_v2 }
 0x695   :  { %v2381_v35 = vadd.f32 1.0, %v3645_v4  ;;  %v3647_v53 = vpop.eup %3646 }
 0x696   :  { %3650 = vrcp.f32 %v2375_v5  ;;  %v3649_v38 = vpop.eup %3648  ;;  %v2388_v42 = vadd.f32 1.0, %v3647_v53 }
 0x697   :  { %3652 = vrcp.f32 %v2381_v35 }
 0x698   :  { %3654 = vrcp.f32 %v2388_v42 }
 0x6a0   :  { %v3651_v39 = vpop.eup %3650 }
 0x6a1   :  { %v3653_v40 = vpop.eup %3652  ;;  %v2392_v41 = vmul.f32 %v3651_v39, %v3649_v38 }
 0x6a2   :  { %v2391_v43 = vmul.f32 %v3653_v40, %v4476_v3  ;;  %v3655_v46 = vpop.eup %3654 }
 0x6a4   :  { %v4518_v45 = vadd.f32 %v2392_v41, %v2391_v43 }
 0x6a6   :  { %3656 = vtanh.f32 %v4518_v45 }
 0x6b0   :  { %v3657_v37 = vpop.eup %3656 }
 0x6b1   :  { %v2395_v47 = vmul.f32 %v3657_v37, %v3655_v46 }
 0x6b3   :  { %v2396_v48 = vpack.c.bf16 %v2395_v47, %v2395_v47 }
 0x6b5   :  { %2398 = vst [vmem:[#allocation14 + $0x14] sm:$0xf] %v2396_v48  ;;  %2631 = vmatmul.mubr.bf16.vlgmr.msra.gmra.mrb[40].mxu0 %v2396_v48  ;;  %2672 = vmatmul.mubr.bf16.vlgmr.msra.gmra.mrb[40].mxu1 %v2396_v48 }
 0x6b6   :  { %2911 = vmatpush1.bf16.msra.mxu0 %v4335_v13  ;;  %2952 = vmatpush1.bf16.msra.mxu1 %v4337_v24  ;;  %v4661_v24 = vld [vmem:[#allocation36_spill] sm:$0xff] }
 0x6b7   :  { %2912 = vmatprep.subr.bf16.mxu0 %v4343_v32  ;;  %2953 = vmatprep.subr.bf16.mxu1 %v4345_v16  ;;  %v4662_v16 = vld [vmem:[#allocation37_spill] sm:$0xff] }
 0x6b8   :  { %2942 = vmatprep.mubr.bf16.mxu0 %v4647_v14  ;;  %2983 = vmatprep.mubr.bf16.mxu1 %v4647_v14 }
 0x6ba   :  { %2913 = vmatpush1.bf16.msra.mxu0 %v4347_v15  ;;  %2954 = vmatpush1.bf16.msra.mxu1 %v4349_v17 }
 0x6bb   :  { %2914 = vmatprep.subr.bf16.mxu0 %v4355_v19  ;;  %2955 = vmatprep.subr.bf16.mxu1 %v4357_v18  ;;  %v4663_v18 = vld [vmem:[#allocation38_spill] sm:$0xff] }
 0x6be   :  { %2915 = vmatpush1.bf16.msra.mxu0 %v4359_v20  ;;  %2956 = vmatpush1.bf16.msra.mxu1 %v4361_v0  ;;  %v4664_v0 = vld [vmem:[#allocation39_spill] sm:$0xff] }
 0x6bf   :  { %2916 = vmatprep.subr.bf16.mxu0 %v4367_v21  ;;  %2957 = vmatprep.subr.bf16.mxu1 %v4369_v33 }
 0x6c2   :  { %2917 = vmatpush1.bf16.msra.mxu0 %v4371_v34  ;;  %2958 = vmatpush1.bf16.msra.mxu1 %v4373_v22 }
 0x6c3   :  { %2918 = vmatprep.subr.bf16.mxu0 %v4381_v25  ;;  %2959 = vmatprep.subr.bf16.mxu1 %v4385_v29 }
 0x6c6   :  { %2919 = vmatpush1.bf16.msra.mxu0 %v4379_v28  ;;  %2960 = vmatpush1.bf16.msra.mxu1 %v4383_v27 }
 0x6c7   :  { %2920 = vmatprep.subr.bf16.mxu0 %v4387_v10  ;;  %2961 = vmatprep.subr.bf16.mxu1 %v4390_v30 }
 0x6ca   :  { %2921 = vmatpush1.bf16.msra.mxu0 %v4394_v62  ;;  %2962 = vmatpush1.bf16.msra.mxu1 %v4398_v26 }
 0x6cb   :  { %2922 = vmatprep.subr.bf16.mxu0 %v4400_v8  ;;  %2963 = vmatprep.subr.bf16.mxu1 %v4403_v44 }
 0x6ce   :  { %2923 = vmatpush1.bf16.msra.mxu0 %v4406_v11  ;;  %2964 = vmatpush1.bf16.msra.mxu1 %v4410_v31 }
 0x6cf   :  { %2924 = vmatprep.subr.bf16.mxu0 %v4412_v23  ;;  %2965 = vmatprep.subr.bf16.mxu1 %v4415_v7 }
 0x6d2   :  { %2925 = vmatpush1.bf16.msra.mxu0 %v4418_v9  ;;  %2966 = vmatpush1.bf16.msra.mxu1 %v4422_v36 }
 0x788   :  { %v2632_v14 = vpop.f32.mrb[40].mxu0  ;;  %v2673_v13 = vpop.f32.mrb[40].mxu1 }
 0x789   :  { %v2680_v32 = vadd.f32 %v2632_v14, %v4661_v24  ;;  %v2682_v15 = vadd.f32 %v2673_v13, %v4662_v16  ;;  %v2634_v17 = vpop.f32.mrb[41].mxu0  ;;  %v2675_v19 = vpop.f32.mrb[41].mxu1 }
 0x78a   :  { %v2681_v20 = vadd.f32 %v2634_v17, %v4663_v18  ;;  %v2683_v21 = vadd.f32 %v2675_v19, %v4664_v0  ;;  %v2636_v33 = vpop.f32.mrb[42].mxu0  ;;  %v2677_v34 = vpop.f32.mrb[42].mxu1 }
 0x78b   :  { %v3363_v22 = vmul.f32 -1.442695, %v2680_v32  ;;  %v2637_v28 = vpop.f32.mrb[43].mxu0  ;;  %v2678_v25 = vpop.f32.mrb[43].mxu1 }
 0x78c   :  { %v3364_v27 = vmul.f32 -1.442695, %v2681_v20  ;;  %v3365_v29 = vmul.f32 -1.442695, %v2683_v21 }
 0x78d   :  { %3658 = vpow2.f32 %v3363_v22 }
 0x78e   :  { %3660 = vpow2.f32 %v3364_v27 }
 0x78f   :  { %3662 = vpow2.f32 %v3365_v29 }
 0x790   :  { %3664 = vtanh.f32 %v2682_v15 }
 0x797   :  { %v3659_v10 = vpop.eup %3658 }
 0x798   :  { %v3661_v30 = vpop.eup %3660  ;;  %v2687_v62 = vadd.f32 1.0, %v3659_v10 }
 0x799   :  { %v2693_v26 = vadd.f32 1.0, %v3661_v30  ;;  %v3663_v8 = vpop.eup %3662 }
 0x79a   :  { %3666 = vrcp.f32 %v2687_v62  ;;  %v3665_v44 = vpop.eup %3664  ;;  %v2700_v7 = vadd.f32 1.0, %v3663_v8 }
 0x79b   :  { %3668 = vrcp.f32 %v2693_v26 }
 0x79c   :  { %3670 = vrcp.f32 %v2700_v7 }
 0x7a4   :  { %v3667_v11 = vpop.eup %3666 }
 0x7a5   :  { %v3669_v31 = vpop.eup %3668  ;;  %v2704_v23 = vmul.f32 %v3667_v11, %v3665_v44 }
 0x7a6   :  { %v2703_v9 = vmul.f32 %v3669_v31, %v4518_v45  ;;  %v3671_v3 = vpop.eup %3670 }
 0x7a8   :  { %v2705_v36 = vadd.f32 %v2704_v23, %v2703_v9 }
 0x7aa   :  { %3672 = vtanh.f32 %v2705_v36 }
 0x7b4   :  { %v3673_v49 = vpop.eup %3672 }
 0x7b5   :  { %v2707_v50 = vmul.f32 %v3673_v49, %v3671_v3 }
 0x7b7   :  { %v2708_v51 = vpack.c.bf16 %v2707_v50, %v2707_v50 }
 0x7b9   :  { %2710 = vst [vmem:[#allocation14 + $0x18] sm:$0xf] %v2708_v51  ;;  %2943 = vmatmul.mubr.bf16.vlgmr.msra.gmra.mrb[44].mxu0 %v2708_v51  ;;  %2984 = vmatmul.mubr.bf16.vlgmr.msra.gmra.mrb[44].mxu1 %v2708_v51 }
 0x88c   :  { %v2944_v52 = vpop.f32.mrb[44].mxu0  ;;  %v2985_v54 = vpop.f32.mrb[44].mxu1 }
 0x88d   :  { %v2992_v56 = vadd.f32 %v2944_v52, %v4665_v55  ;;  %v2994_v58 = vadd.f32 %v2985_v54, %v4666_v57  ;;  %v2946_v59 = vpop.f32.mrb[45].mxu0  ;;  %v2987_v60 = vpop.f32.mrb[45].mxu1 }
 0x88e   :  { %v2993_v63 = vadd.f32 %v2946_v59, %v4667_v61  ;;  %v2995_v6 = vadd.f32 %v2987_v60, %v4668_v1  ;;  %v2948_v12 = vpop.f32.mrb[46].mxu0  ;;  %v2989_v2 = vpop.f32.mrb[46].mxu1 }
 0x88f   :  { %v3398_v4 = vmul.f32 -1.442695, %v2992_v56  ;;  %v2949_v5 = vpop.f32.mrb[47].mxu0  ;;  %v2990_v35 = vpop.f32.mrb[47].mxu1 }
 0x890   :  { %v3399_v53 = vmul.f32 -1.442695, %v2993_v63  ;;  %v3400_v38 = vmul.f32 -1.442695, %v2995_v6 }
 0x891   :  { %3674 = vpow2.f32 %v3398_v4 }
 0x892   :  { %3676 = vpow2.f32 %v3399_v53 }
 0x893   :  { %3678 = vpow2.f32 %v3400_v38 }
 0x894   :  { %3680 = vtanh.f32 %v2994_v58 }
 0x89b   :  { %v3675_v39 = vpop.eup %3674 }
 0x89c   :  { %v3677_v40 = vpop.eup %3676  ;;  %v2999_v41 = vadd.f32 1.0, %v3675_v39 }
 0x89d   :  { %v3005_v42 = vadd.f32 1.0, %v3677_v40  ;;  %v3679_v43 = vpop.eup %3678 }
 0x89e   :  { %3682 = vrcp.f32 %v2999_v41  ;;  %v3681_v45 = vpop.eup %3680  ;;  %v3012_v48 = vadd.f32 1.0, %v3679_v43 }
 0x89f   :  { %3684 = vrcp.f32 %v3005_v42 }
 0x8a0   :  { %3686 = vrcp.f32 %v3012_v48 }
 0x8a8   :  { %v3683_v46 = vpop.eup %3682 }
 0x8a9   :  { %v3685_v37 = vpop.eup %3684  ;;  %v3016_v47 = vmul.f32 %v3683_v46, %v3681_v45 }
 0x8aa   :  { %v3015_v14 = vmul.f32 %v3685_v37, %v2705_v36  ;;  %v3687_v24 = vpop.eup %3686 }
 0x8ac   :  { %v3017_v13 = vadd.f32 %v3016_v47, %v3015_v14 }
 0x8ae   :  { %3688 = vtanh.f32 %v3017_v13  ;;  %3031 = vst [vmem:[#allocation17] sm:$0xff] %v3017_v13 }
 0x8b8   :  { %v3689_v32 = vpop.eup %3688 }
 0x8b9   :  { %v3019_v16 = vmul.f32 %v3689_v32, %v3687_v24 }
 0x8bb   :  { %v3020_v15 = vpack.c.bf16 %v3019_v16, %v3019_v16  ;;  %3029 = vst [vmem:[#allocation15] sm:$0xff] %v3019_v16 }
 0x8bc   :  { %3811 = shalt.err (!%p3808_p2)
}
 0x8bd   :  { %s3812_s29 = scalar_lea.hbm %s4622_s7, 128 }
 0x8be   :  { %p3813_p3 = scmp.ne.s32.totalorder %s4622_s7, %s3812_s29  ;;  %p3816_p4 = scmp.lt.u32.totalorder %s3812_s29, %s4622_s7 }
 0x8c0   :  { %p3818_p5 = pnand %p3816_p4, %p3813_p3 }
 0x8c2   :  { %3821 = shalt.err (!%p3818_p5)
}
 0x8c3   :  { %3053 = dma.vmem_to_hbm [thread:$0]  %s3051_s27, 128, %s4622_s7, [#allocation16]   ;;  %3022 = vst [vmem:[#allocation14 + $0x1c] sm:$0xf] %v3020_v15 }
 0x8c4   :  { %s3822_s17 = scalar_lea.vmem %s4562_s22, 128  ;;  %p3827_p7 = scmp.lt.s32.totalorder %s4562_s22, %s4562_s22 }
 0x8c5   :  { %p3823_p6 = scmp.ne.s32.totalorder %s4562_s22, %s3822_s17  ;;  %p3828_p8 = scmp.lt.s32.totalorder %s3822_s17, %s3822_s17 }
 0x8c7   :  { %p3829_p9 = por %p3828_p8, %p3827_p7 }
 0x8c9   :  { %p3830_p10 = pnand %p3829_p9, %p3823_p6 }
 0x8cb   :  { %3833 = shalt.err (!%p3830_p10)
}
 0x8cc   :  { %s3834_s3 = scalar_lea.hbm %s4623_s8, 128 }
 0x8cd   :  { %p3835_p11 = scmp.ne.s32.totalorder %s4623_s8, %s3834_s3  ;;  %p3838_p12 = scmp.lt.u32.totalorder %s3834_s3, %s4623_s8 }
 0x8cf   :  { %p3840_p13 = pnand %p3838_p12, %p3835_p11 }
 0x8d1   :  { %3843 = shalt.err (!%p3840_p13)
}
 0x8d2   :  { %3063 = dma.vmem_to_hbm [thread:$0]  %s4562_s22, 128, %s4623_s8, [#allocation16]  }
 0x8d3   :  { %s3844_s1 = scalar_lea.vmem %s4564_s24, 512  ;;  %p3849_p1 = scmp.lt.s32.totalorder %s4564_s24, %s4564_s24 }
 0x8d4   :  { %p3845_p0 = scmp.ne.s32.totalorder %s4564_s24, %s3844_s1  ;;  %p3850_p2 = scmp.lt.s32.totalorder %s3844_s1, %s3844_s1 }
 0x8d6   :  { %p3851_p3 = por %p3850_p2, %p3849_p1 }
 0x8d8   :  { %p3852_p4 = pnand %p3851_p3, %p3845_p0 }
 0x8da   :  { %3855 = shalt.err (!%p3852_p4)
}
 0x8db   :  { %s3856_s21 = scalar_lea.hbm %s4621_s6, 512 }
 0x8dc   :  { %p3857_p5 = scmp.ne.s32.totalorder %s4621_s6, %s3856_s21  ;;  %p3860_p6 = scmp.lt.u32.totalorder %s3856_s21, %s4621_s6 }
 0x8de   :  { %p3862_p7 = pnand %p3860_p6, %p3857_p5 }
 0x8e0   :  { %3865 = shalt.err (!%p3862_p7)
}
 0x8e1   :  { %3043 = dma.vmem_to_hbm [thread:$0]  %s4564_s24, 512, %s4621_s6, [#allocation7], %s3882_s0, %s3882_s0, %s3883_s9  }
 0x8e2   :  { %3872 = dma.done.wait [#allocation7], 512  }
 0x8e3   :  { %3873 = vsyncadd [#allocation7], 4294966784 }
 0x8e4   :  { %3874 = dma.done.wait [#allocation16], 256  }
 0x8e5   :  { %3875 = vsyncadd [#allocation16], 4294967040 }
 0x8e6   :  { %3073 = vsyncpa [#allocation6], 1 }
 0x8e7   :  { %3074 = vsyncpa [#allocation9], 1 }
 0x8e8   :  { %3075 = vsyncpa [#allocation12], 1 }
 0x8e9   :  { %3076 = vsyncpa [#allocation7], 1 }
 0x8ea   :  { %3077 = vsyncpa [#allocation16], 1 }

</bundles_post_ra>
